<compile_context>
chip_gen: v5e
topology: v5e:2x2
jax: 0.10.0
libtpu: 0.0.40
codegen_flags: <defaults>
</compile_context>

<pallas_src>
import jax
import jax.numpy as jnp
from jax.experimental import pallas as pl
from jax.experimental.pallas import tpu as pltpu

NB_CLASSES = 100   # label_emb = nn.Embedding(100, 2)
NB_PERCENT = 100   # percent_emb = nn.Embedding(100, 5)
HIDDEN = 10        # LSTM hidden size
T = 2              # n_step (seq length)
IN_FEAT = 2        # LSTM input size


def mentor_kernel(label_ref, pt_ref, l_ref, h0_ref, c0_ref,
                  wih_ref, whh_ref, b_ref,
                  emb_fc1_ref, w1_lstm_ref, fc1_b_ref, fc2_w_t_ref, fc2_b_ref,
                  out_ref):
    B = out_ref.shape[0]

    # ---- in-kernel one-hot (lane iota) + fused embedding/fc1 tables (MXU) ----
    lane_iota = jax.lax.broadcasted_iota(jnp.int32, (B, NB_CLASSES), 1)
    oh_label = (lane_iota == label_ref[...]).astype(jnp.float32)      # (B, 100)
    oh_pt = (lane_iota == pt_ref[...]).astype(jnp.float32)            # (B, 100)
    # emb_fc1[0] = lemb @ W1_label, emb_fc1[1] = pemb @ W1_percent  (each (100, 20))
    pre1 = (jnp.dot(oh_label, emb_fc1_ref[0], preferred_element_type=jnp.float32)
            + jnp.dot(oh_pt, emb_fc1_ref[1], preferred_element_type=jnp.float32))  # (B, 20)

    # ---- bidirectional LSTM, unrolled over T = 2, per-gate weight blocks ----
    # wih_ref: (8, 2, 10), whh_ref: (8, 10, 10), b_ref: (8, 1, 10)
    # index k = dir*4 + gate, gate order (i, f, g, o); leading-axis indexing is
    # a plain tile select -> no lane/sublane relayouts.
    def cell(x, h, c, d):
        def gate(g):
            k = d * 4 + g
            return (jnp.dot(x, wih_ref[k], preferred_element_type=jnp.float32)
                    + jnp.dot(h, whh_ref[k], preferred_element_type=jnp.float32)
                    + b_ref[k])
        i = jax.nn.sigmoid(gate(0))
        f = jax.nn.sigmoid(gate(1))
        g_ = jnp.tanh(gate(2))
        o = jax.nn.sigmoid(gate(3))
        c_new = f * c + i * g_
        return o * jnp.tanh(c_new), c_new

    x0 = l_ref[0]                         # (B, 2)  t = 0
    x1 = l_ref[1]                         # (B, 2)  t = 1

    # forward direction (t = 0, 1)
    hf0, cf = cell(x0, h0_ref[0], c0_ref[0], 0)
    hf1, cf = cell(x1, hf0, cf, 0)
    # backward direction (t = 1, 0)
    hb1, cb = cell(x1, h0_ref[1], c0_ref[1], 1)
    hb0, cb = cell(x0, hb1, cb, 1)

    out_fwd = hf0 + hf1                   # sum over time, forward half  (B, 10)
    out_bwd = hb0 + hb1                   # sum over time, backward half (B, 10)

    # ---- fc1 as summed partial matmuls (no concat), tanh, fc2, sigmoid ----
    pre1 = (pre1
            + jnp.dot(out_fwd, w1_lstm_ref[0], preferred_element_type=jnp.float32)
            + jnp.dot(out_bwd, w1_lstm_ref[1], preferred_element_type=jnp.float32)
            + fc1_b_ref[...])
    z1 = jnp.tanh(pre1)                                               # (B, 20)
    z = jax.nn.sigmoid(jnp.dot(z1, fc2_w_t_ref[...],
                               preferred_element_type=jnp.float32)
                       + fc2_b_ref[...])                              # (B, 1)
    out_ref[...] = z


def pack_params(params):
    """One-time repacking of PyTorch-layout params into kernel layout.

    Done once at init so the per-call wrapper issues no transposes/one_hots.
    """
    H = HIDDEN
    hp = jax.lax.Precision.HIGHEST

    def per_gate_t(w):      # (4H, in) -> (4, in, H), gate order (i, f, g, o)
        return jnp.stack([w[g * H:(g + 1) * H, :].T for g in range(4)], axis=0)

    def per_gate_b(b):      # (1, 4H) -> (4, 1, H)
        return jnp.stack([b[:, g * H:(g + 1) * H] for g in range(4)], axis=0)

    wih = jnp.concatenate([per_gate_t(params["wih_f"]),
                           per_gate_t(params["wih_b"])], axis=0)       # (8, 2, 10)
    whh = jnp.concatenate([per_gate_t(params["whh_f"]),
                           per_gate_t(params["whh_b"])], axis=0)       # (8, 10, 10)
    b = jnp.concatenate([per_gate_b(params["b_f"]),
                         per_gate_b(params["b_b"])], axis=0)           # (8, 1, 10)

    fc1_w_t = params["fc1_w"].T                                        # (27, 20)
    w1_label, w1_pt = fc1_w_t[0:2], fc1_w_t[2:7]
    w1_fwd, w1_bwd = fc1_w_t[7:17], fc1_w_t[17:27]

    # Fold embedding tables into the fc1 column blocks: one-hot @ (emb @ W1)
    # == emb[row] @ W1.  Computed once, in full f32.
    emb_fc1 = jnp.stack([jnp.dot(params["lemb"], w1_label, precision=hp),
                         jnp.dot(params["pemb"], w1_pt, precision=hp)], axis=0)  # (2,100,20)
    w1_lstm = jnp.stack([w1_fwd, w1_bwd], axis=0)                      # (2, 10, 20)

    return dict(wih=wih, whh=whh, b=b, emb_fc1=emb_fc1, w1_lstm=w1_lstm,
                fc1_b=params["fc1_b"], fc2_w_t=params["fc2_w"].T,
                fc2_b=params["fc2_b"])


def mentor_forward(label2d, pt2d, l, h0, c0, packed):
    """label2d/pt2d: (B,1) int32.  `packed` comes from pack_params (no per-call prep)."""
    B = label2d.shape[0]
    args = (label2d, pt2d, l, h0, c0,
            packed["wih"], packed["whh"], packed["b"],
            packed["emb_fc1"], packed["w1_lstm"],
            packed["fc1_b"], packed["fc2_w_t"], packed["fc2_b"])
    vmem = pl.BlockSpec(memory_space=pltpu.MemorySpace.VMEM)
    return pl.pallas_call(
        mentor_kernel,
        out_shape=jax.ShapeDtypeStruct((B, 1), jnp.float32),
        in_specs=[vmem] * len(args),
        out_specs=vmem,
    )(*args)


def init_params(key):
    """Deterministic synthetic parameters (canonical PyTorch weight layouts)."""
    ks = jax.random.split(key, 12)

    def u(k, shape, scale):
        return jax.random.uniform(k, shape, jnp.float32, -scale, scale)

    s_lstm = 1.0 / (HIDDEN ** 0.5)
    s_fc1 = 1.0 / (27.0 ** 0.5)
    s_fc2 = 1.0 / (20.0 ** 0.5)
    return dict(
        lemb=jax.random.normal(ks[0], (NB_CLASSES, 2), jnp.float32),
        pemb=jax.random.normal(ks[1], (NB_PERCENT, 5), jnp.float32),
        wih_f=u(ks[2], (4 * HIDDEN, IN_FEAT), s_lstm),
        whh_f=u(ks[3], (4 * HIDDEN, HIDDEN), s_lstm),
        b_f=u(ks[4], (1, 4 * HIDDEN), s_lstm),    # combined b_ih + b_hh
        wih_b=u(ks[5], (4 * HIDDEN, IN_FEAT), s_lstm),
        whh_b=u(ks[6], (4 * HIDDEN, HIDDEN), s_lstm),
        b_b=u(ks[7], (1, 4 * HIDDEN), s_lstm),
        fc1_w=u(ks[8], (20, 27), s_fc1),
        fc1_b=u(ks[9], (1, 20), s_fc1),
        fc2_w=u(ks[10], (1, 20), s_fc2),
        fc2_b=u(ks[11], (1, 1), s_fc2),
    )


def reference_forward(label, pt, l, h0, c0, params):
    """Pure-JAX reference mirroring the PyTorch module."""
    hp = jax.lax.Precision.HIGHEST
    x_label = params["lemb"][label]
    x_percent = params["pemb"][pt]

    def cell(x, h, c, wih, whh, b):
        gates = (jnp.dot(x, wih.T, precision=hp)
                 + jnp.dot(h, whh.T, precision=hp) + b)
        i = jax.nn.sigmoid(gates[:, 0:HIDDEN])
        f = jax.nn.sigmoid(gates[:, HIDDEN:2 * HIDDEN])
        g = jnp.tanh(gates[:, 2 * HIDDEN:3 * HIDDEN])
        o = jax.nn.sigmoid(gates[:, 3 * HIDDEN:4 * HIDDEN])
        c2 = f * c + i * g
        return o * jnp.tanh(c2), c2

    hf, cf = h0[0], c0[0]
    outs_f = []
    for t in range(T):
        hf, cf = cell(l[t], hf, cf, params["wih_f"], params["whh_f"], params["b_f"])
        outs_f.append(hf)
    hb, cb = h0[1], c0[1]
    outs_b = [None] * T
    for t in reversed(range(T)):
        hb, cb = cell(l[t], hb, cb, params["wih_b"], params["whh_b"], params["b_b"])
        outs_b[t] = hb
    out = sum(jnp.concatenate([outs_f[t], outs_b[t]], axis=1) for t in range(T))
    x = jnp.concatenate([x_label, x_percent, out], axis=1)
    z = jnp.tanh(jnp.dot(x, params["fc1_w"].T, precision=hp) + params["fc1_b"])
    return jax.nn.sigmoid(jnp.dot(z, params["fc2_w"].T, precision=hp) + params["fc2_b"])


if __name__ == "__main__":
    key = jax.random.PRNGKey(0)
    kp, kl, kpt, kseq, kh, kc = jax.random.split(key, 6)

    B = 8
    params = init_params(kp)
    packed = pack_params(params)          # one-time packing (no per-call .T / one_hot)

    label = jax.random.randint(kl, (B,), 0, NB_CLASSES, dtype=jnp.int32)
    pt = jax.random.randint(kpt, (B,), 0, NB_PERCENT, dtype=jnp.int32)
    l = jax.random.uniform(kseq, (T, B, IN_FEAT), jnp.float32)
    # the PyTorch module draws random h0/c0 inside forward(); here they are
    # deterministic inputs generated from the same PRNG key.
    h0 = jax.random.uniform(kh, (2, B, HIDDEN), jnp.float32)
    c0 = jax.random.uniform(kc, (2, B, HIDDEN), jnp.float32)

    label2d = label.reshape(B, 1)
    pt2d = pt.reshape(B, 1)

    z = mentor_forward(label2d, pt2d, l, h0, c0, packed)
    z = jax.block_until_ready(z)

    z_ref = reference_forward(label, pt, l, h0, c0, params)
    assert z.shape == (B, 1), z.shape
    assert bool(jnp.allclose(z, z_ref, atol=2e-5, rtol=2e-5)), (z, z_ref)
    print("KERNEL_OK")
</pallas_src>

<mosaic_0001>
module attributes {stable_mosaic.version = 11 : i64} {
  func.func @mentor_kernel(%arg0: memref<8x1xi32, #tpu.memory_space<vmem>>, %arg1: memref<8x1xi32, #tpu.memory_space<vmem>>, %arg2: memref<2x8x2xf32, #tpu.memory_space<vmem>>, %arg3: memref<2x8x10xf32, #tpu.memory_space<vmem>>, %arg4: memref<2x8x10xf32, #tpu.memory_space<vmem>>, %arg5: memref<8x2x10xf32, #tpu.memory_space<vmem>>, %arg6: memref<8x10x10xf32, #tpu.memory_space<vmem>>, %arg7: memref<8x1x10xf32, #tpu.memory_space<vmem>>, %arg8: memref<2x100x20xf32, #tpu.memory_space<vmem>>, %arg9: memref<2x10x20xf32, #tpu.memory_space<vmem>>, %arg10: memref<1x20xf32, #tpu.memory_space<vmem>>, %arg11: memref<20x1xf32, #tpu.memory_space<vmem>>, %arg12: memref<1x1xf32, #tpu.memory_space<vmem>>, %arg13: memref<8x1xf32, #tpu.memory_space<vmem>>) attributes {dimension_semantics = [], scalar_prefetch = 0 : i64, scratch_operands = 0 : i64, tpu.core_type = #tpu.core_type<tc>} {
    %0 = tpu.iota {dimensions = array<i32: 1>} : vector<8x100xi32>
    %c0 = arith.constant 0 : index
    %c0_0 = arith.constant 0 : index
    %1 = vector.load %arg0[%c0, %c0_0] : memref<8x1xi32, #tpu.memory_space<vmem>>, vector<8x1xi32>
    %2 = vector.broadcast %1 : vector<8x1xi32> to vector<8x100xi32>
    %3 = arith.cmpi eq, %0, %2 : vector<8x100xi32>
    %4 = arith.extui %3 : vector<8x100xi1> to vector<8x100xi32>
    %5 = arith.sitofp %4 : vector<8x100xi32> to vector<8x100xf32>
    %c0_1 = arith.constant 0 : index
    %c0_2 = arith.constant 0 : index
    %6 = vector.load %arg1[%c0_1, %c0_2] : memref<8x1xi32, #tpu.memory_space<vmem>>, vector<8x1xi32>
    %7 = vector.broadcast %6 : vector<8x1xi32> to vector<8x100xi32>
    %8 = arith.cmpi eq, %0, %7 : vector<8x100xi32>
    %9 = arith.extui %8 : vector<8x100xi1> to vector<8x100xi32>
    %10 = arith.sitofp %9 : vector<8x100xi32> to vector<8x100xf32>
    %c0_3 = arith.constant 0 : index
    %c0_4 = arith.constant 0 : index
    %c0_5 = arith.constant 0 : index
    %11 = vector.load %arg8[%c0_3, %c0_4, %c0_5] : memref<2x100x20xf32, #tpu.memory_space<vmem>>, vector<1x100x20xf32>
    %12 = vector.shape_cast %11 : vector<1x100x20xf32> to vector<100x20xf32>
    %cst = arith.constant dense<0.000000e+00> : vector<8x20xf32>
    %13 = tpu.matmul %5, %12, %cst {dimension_numbers = #tpu.dot_dimension_numbers<[1], [0], [0], [1], [0, 0, 1, 1], [], []>} : vector<8x100xf32>, vector<100x20xf32>, vector<8x20xf32> -> vector<8x20xf32>
    %c1 = arith.constant 1 : index
    %c0_6 = arith.constant 0 : index
    %c0_7 = arith.constant 0 : index
    %14 = vector.load %arg8[%c1, %c0_6, %c0_7] : memref<2x100x20xf32, #tpu.memory_space<vmem>>, vector<1x100x20xf32>
    %15 = vector.shape_cast %14 : vector<1x100x20xf32> to vector<100x20xf32>
    %cst_8 = arith.constant dense<0.000000e+00> : vector<8x20xf32>
    %16 = tpu.matmul %10, %15, %cst_8 {dimension_numbers = #tpu.dot_dimension_numbers<[1], [0], [0], [1], [0, 0, 1, 1], [], []>} : vector<8x100xf32>, vector<100x20xf32>, vector<8x20xf32> -> vector<8x20xf32>
    %17 = arith.addf %13, %16 : vector<8x20xf32>
    %c0_9 = arith.constant 0 : index
    %c0_10 = arith.constant 0 : index
    %c0_11 = arith.constant 0 : index
    %18 = vector.load %arg2[%c0_9, %c0_10, %c0_11] : memref<2x8x2xf32, #tpu.memory_space<vmem>>, vector<1x8x2xf32>
    %19 = vector.shape_cast %18 : vector<1x8x2xf32> to vector<8x2xf32>
    %c1_12 = arith.constant 1 : index
    %c0_13 = arith.constant 0 : index
    %c0_14 = arith.constant 0 : index
    %20 = vector.load %arg2[%c1_12, %c0_13, %c0_14] : memref<2x8x2xf32, #tpu.memory_space<vmem>>, vector<1x8x2xf32>
    %21 = vector.shape_cast %20 : vector<1x8x2xf32> to vector<8x2xf32>
    %c0_15 = arith.constant 0 : index
    %c0_16 = arith.constant 0 : index
    %c0_17 = arith.constant 0 : index
    %22 = vector.load %arg3[%c0_15, %c0_16, %c0_17] : memref<2x8x10xf32, #tpu.memory_space<vmem>>, vector<1x8x10xf32>
    %23 = vector.shape_cast %22 : vector<1x8x10xf32> to vector<8x10xf32>
    %c0_18 = arith.constant 0 : index
    %c0_19 = arith.constant 0 : index
    %c0_20 = arith.constant 0 : index
    %24 = vector.load %arg4[%c0_18, %c0_19, %c0_20] : memref<2x8x10xf32, #tpu.memory_space<vmem>>, vector<1x8x10xf32>
    %25 = vector.shape_cast %24 : vector<1x8x10xf32> to vector<8x10xf32>
    %c0_21 = arith.constant 0 : index
    %c0_22 = arith.constant 0 : index
    %c0_23 = arith.constant 0 : index
    %26 = vector.load %arg5[%c0_21, %c0_22, %c0_23] : memref<8x2x10xf32, #tpu.memory_space<vmem>>, vector<1x2x10xf32>
    %27 = vector.shape_cast %26 : vector<1x2x10xf32> to vector<2x10xf32>
    %cst_24 = arith.constant dense<0.000000e+00> : vector<8x10xf32>
    %28 = tpu.matmul %19, %27, %cst_24 {dimension_numbers = #tpu.dot_dimension_numbers<[1], [0], [0], [1], [0, 0, 1, 1], [], []>} : vector<8x2xf32>, vector<2x10xf32>, vector<8x10xf32> -> vector<8x10xf32>
    %c0_25 = arith.constant 0 : index
    %c0_26 = arith.constant 0 : index
    %c0_27 = arith.constant 0 : index
    %29 = vector.load %arg6[%c0_25, %c0_26, %c0_27] : memref<8x10x10xf32, #tpu.memory_space<vmem>>, vector<1x10x10xf32>
    %30 = vector.shape_cast %29 : vector<1x10x10xf32> to vector<10x10xf32>
    %cst_28 = arith.constant dense<0.000000e+00> : vector<8x10xf32>
    %31 = tpu.matmul %23, %30, %cst_28 {dimension_numbers = #tpu.dot_dimension_numbers<[1], [0], [0], [1], [0, 0, 1, 1], [], []>} : vector<8x10xf32>, vector<10x10xf32>, vector<8x10xf32> -> vector<8x10xf32>
    %32 = arith.addf %28, %31 : vector<8x10xf32>
    %c0_29 = arith.constant 0 : index
    %c0_30 = arith.constant 0 : index
    %c0_31 = arith.constant 0 : index
    %33 = vector.load %arg7[%c0_29, %c0_30, %c0_31] : memref<8x1x10xf32, #tpu.memory_space<vmem>>, vector<1x1x10xf32>
    %34 = vector.shape_cast %33 : vector<1x1x10xf32> to vector<1x10xf32>
    %35 = vector.broadcast %34 : vector<1x10xf32> to vector<8x10xf32>
    %36 = arith.addf %32, %35 : vector<8x10xf32>
    %37 = arith.negf %36 : vector<8x10xf32>
    %38 = math.exp %37 : vector<8x10xf32>
    %cst_32 = arith.constant 1.000000e+00 : f32
    %39 = vector.broadcast %cst_32 : f32 to vector<8x10xf32>
    %40 = arith.addf %39, %38 : vector<8x10xf32>
    %41 = arith.divf %39, %40 : vector<8x10xf32>
    %c1_33 = arith.constant 1 : index
    %c0_34 = arith.constant 0 : index
    %c0_35 = arith.constant 0 : index
    %42 = vector.load %arg5[%c1_33, %c0_34, %c0_35] : memref<8x2x10xf32, #tpu.memory_space<vmem>>, vector<1x2x10xf32>
    %43 = vector.shape_cast %42 : vector<1x2x10xf32> to vector<2x10xf32>
    %cst_36 = arith.constant dense<0.000000e+00> : vector<8x10xf32>
    %44 = tpu.matmul %19, %43, %cst_36 {dimension_numbers = #tpu.dot_dimension_numbers<[1], [0], [0], [1], [0, 0, 1, 1], [], []>} : vector<8x2xf32>, vector<2x10xf32>, vector<8x10xf32> -> vector<8x10xf32>
    %c1_37 = arith.constant 1 : index
    %c0_38 = arith.constant 0 : index
    %c0_39 = arith.constant 0 : index
    %45 = vector.load %arg6[%c1_37, %c0_38, %c0_39] : memref<8x10x10xf32, #tpu.memory_space<vmem>>, vector<1x10x10xf32>
    %46 = vector.shape_cast %45 : vector<1x10x10xf32> to vector<10x10xf32>
    %cst_40 = arith.constant dense<0.000000e+00> : vector<8x10xf32>
    %47 = tpu.matmul %23, %46, %cst_40 {dimension_numbers = #tpu.dot_dimension_numbers<[1], [0], [0], [1], [0, 0, 1, 1], [], []>} : vector<8x10xf32>, vector<10x10xf32>, vector<8x10xf32> -> vector<8x10xf32>
    %48 = arith.addf %44, %47 : vector<8x10xf32>
    %c1_41 = arith.constant 1 : index
    %c0_42 = arith.constant 0 : index
    %c0_43 = arith.constant 0 : index
    %49 = vector.load %arg7[%c1_41, %c0_42, %c0_43] : memref<8x1x10xf32, #tpu.memory_space<vmem>>, vector<1x1x10xf32>
    %50 = vector.shape_cast %49 : vector<1x1x10xf32> to vector<1x10xf32>
    %51 = vector.broadcast %50 : vector<1x10xf32> to vector<8x10xf32>
    %52 = arith.addf %48, %51 : vector<8x10xf32>
    %53 = arith.negf %52 : vector<8x10xf32>
    %54 = math.exp %53 : vector<8x10xf32>
    %cst_44 = arith.constant 1.000000e+00 : f32
    %55 = vector.broadcast %cst_44 : f32 to vector<8x10xf32>
    %56 = arith.addf %55, %54 : vector<8x10xf32>
    %57 = arith.divf %55, %56 : vector<8x10xf32>
    %c2 = arith.constant 2 : index
    %c0_45 = arith.constant 0 : index
    %c0_46 = arith.constant 0 : index
    %58 = vector.load %arg5[%c2, %c0_45, %c0_46] : memref<8x2x10xf32, #tpu.memory_space<vmem>>, vector<1x2x10xf32>
    %59 = vector.shape_cast %58 : vector<1x2x10xf32> to vector<2x10xf32>
    %cst_47 = arith.constant dense<0.000000e+00> : vector<8x10xf32>
    %60 = tpu.matmul %19, %59, %cst_47 {dimension_numbers = #tpu.dot_dimension_numbers<[1], [0], [0], [1], [0, 0, 1, 1], [], []>} : vector<8x2xf32>, vector<2x10xf32>, vector<8x10xf32> -> vector<8x10xf32>
    %c2_48 = arith.constant 2 : index
    %c0_49 = arith.constant 0 : index
    %c0_50 = arith.constant 0 : index
    %61 = vector.load %arg6[%c2_48, %c0_49, %c0_50] : memref<8x10x10xf32, #tpu.memory_space<vmem>>, vector<1x10x10xf32>
    %62 = vector.shape_cast %61 : vector<1x10x10xf32> to vector<10x10xf32>
    %cst_51 = arith.constant dense<0.000000e+00> : vector<8x10xf32>
    %63 = tpu.matmul %23, %62, %cst_51 {dimension_numbers = #tpu.dot_dimension_numbers<[1], [0], [0], [1], [0, 0, 1, 1], [], []>} : vector<8x10xf32>, vector<10x10xf32>, vector<8x10xf32> -> vector<8x10xf32>
    %64 = arith.addf %60, %63 : vector<8x10xf32>
    %c2_52 = arith.constant 2 : index
    %c0_53 = arith.constant 0 : index
    %c0_54 = arith.constant 0 : index
    %65 = vector.load %arg7[%c2_52, %c0_53, %c0_54] : memref<8x1x10xf32, #tpu.memory_space<vmem>>, vector<1x1x10xf32>
    %66 = vector.shape_cast %65 : vector<1x1x10xf32> to vector<1x10xf32>
    %67 = vector.broadcast %66 : vector<1x10xf32> to vector<8x10xf32>
    %68 = arith.addf %64, %67 : vector<8x10xf32>
    %69 = math.tanh %68 : vector<8x10xf32>
    %c3 = arith.constant 3 : index
    %c0_55 = arith.constant 0 : index
    %c0_56 = arith.constant 0 : index
    %70 = vector.load %arg5[%c3, %c0_55, %c0_56] : memref<8x2x10xf32, #tpu.memory_space<vmem>>, vector<1x2x10xf32>
    %71 = vector.shape_cast %70 : vector<1x2x10xf32> to vector<2x10xf32>
    %cst_57 = arith.constant dense<0.000000e+00> : vector<8x10xf32>
    %72 = tpu.matmul %19, %71, %cst_57 {dimension_numbers = #tpu.dot_dimension_numbers<[1], [0], [0], [1], [0, 0, 1, 1], [], []>} : vector<8x2xf32>, vector<2x10xf32>, vector<8x10xf32> -> vector<8x10xf32>
    %c3_58 = arith.constant 3 : index
    %c0_59 = arith.constant 0 : index
    %c0_60 = arith.constant 0 : index
    %73 = vector.load %arg6[%c3_58, %c0_59, %c0_60] : memref<8x10x10xf32, #tpu.memory_space<vmem>>, vector<1x10x10xf32>
    %74 = vector.shape_cast %73 : vector<1x10x10xf32> to vector<10x10xf32>
    %cst_61 = arith.constant dense<0.000000e+00> : vector<8x10xf32>
    %75 = tpu.matmul %23, %74, %cst_61 {dimension_numbers = #tpu.dot_dimension_numbers<[1], [0], [0], [1], [0, 0, 1, 1], [], []>} : vector<8x10xf32>, vector<10x10xf32>, vector<8x10xf32> -> vector<8x10xf32>
    %76 = arith.addf %72, %75 : vector<8x10xf32>
    %c3_62 = arith.constant 3 : index
    %c0_63 = arith.constant 0 : index
    %c0_64 = arith.constant 0 : index
    %77 = vector.load %arg7[%c3_62, %c0_63, %c0_64] : memref<8x1x10xf32, #tpu.memory_space<vmem>>, vector<1x1x10xf32>
    %78 = vector.shape_cast %77 : vector<1x1x10xf32> to vector<1x10xf32>
    %79 = vector.broadcast %78 : vector<1x10xf32> to vector<8x10xf32>
    %80 = arith.addf %76, %79 : vector<8x10xf32>
    %81 = arith.negf %80 : vector<8x10xf32>
    %82 = math.exp %81 : vector<8x10xf32>
    %cst_65 = arith.constant 1.000000e+00 : f32
    %83 = vector.broadcast %cst_65 : f32 to vector<8x10xf32>
    %84 = arith.addf %83, %82 : vector<8x10xf32>
    %85 = arith.divf %83, %84 : vector<8x10xf32>
    %86 = arith.mulf %57, %25 : vector<8x10xf32>
    %87 = arith.mulf %41, %69 : vector<8x10xf32>
    %88 = arith.addf %86, %87 : vector<8x10xf32>
    %89 = math.tanh %88 : vector<8x10xf32>
    %90 = arith.mulf %85, %89 : vector<8x10xf32>
    %c0_66 = arith.constant 0 : index
    %c0_67 = arith.constant 0 : index
    %c0_68 = arith.constant 0 : index
    %91 = vector.load %arg5[%c0_66, %c0_67, %c0_68] : memref<8x2x10xf32, #tpu.memory_space<vmem>>, vector<1x2x10xf32>
    %92 = vector.shape_cast %91 : vector<1x2x10xf32> to vector<2x10xf32>
    %cst_69 = arith.constant dense<0.000000e+00> : vector<8x10xf32>
    %93 = tpu.matmul %21, %92, %cst_69 {dimension_numbers = #tpu.dot_dimension_numbers<[1], [0], [0], [1], [0, 0, 1, 1], [], []>} : vector<8x2xf32>, vector<2x10xf32>, vector<8x10xf32> -> vector<8x10xf32>
    %c0_70 = arith.constant 0 : index
    %c0_71 = arith.constant 0 : index
    %c0_72 = arith.constant 0 : index
    %94 = vector.load %arg6[%c0_70, %c0_71, %c0_72] : memref<8x10x10xf32, #tpu.memory_space<vmem>>, vector<1x10x10xf32>
    %95 = vector.shape_cast %94 : vector<1x10x10xf32> to vector<10x10xf32>
    %cst_73 = arith.constant dense<0.000000e+00> : vector<8x10xf32>
    %96 = tpu.matmul %90, %95, %cst_73 {dimension_numbers = #tpu.dot_dimension_numbers<[1], [0], [0], [1], [0, 0, 1, 1], [], []>} : vector<8x10xf32>, vector<10x10xf32>, vector<8x10xf32> -> vector<8x10xf32>
    %97 = arith.addf %93, %96 : vector<8x10xf32>
    %c0_74 = arith.constant 0 : index
    %c0_75 = arith.constant 0 : index
    %c0_76 = arith.constant 0 : index
    %98 = vector.load %arg7[%c0_74, %c0_75, %c0_76] : memref<8x1x10xf32, #tpu.memory_space<vmem>>, vector<1x1x10xf32>
    %99 = vector.shape_cast %98 : vector<1x1x10xf32> to vector<1x10xf32>
    %100 = vector.broadcast %99 : vector<1x10xf32> to vector<8x10xf32>
    %101 = arith.addf %97, %100 : vector<8x10xf32>
    %102 = arith.negf %101 : vector<8x10xf32>
    %103 = math.exp %102 : vector<8x10xf32>
    %cst_77 = arith.constant 1.000000e+00 : f32
    %104 = vector.broadcast %cst_77 : f32 to vector<8x10xf32>
    %105 = arith.addf %104, %103 : vector<8x10xf32>
    %106 = arith.divf %104, %105 : vector<8x10xf32>
    %c1_78 = arith.constant 1 : index
    %c0_79 = arith.constant 0 : index
    %c0_80 = arith.constant 0 : index
    %107 = vector.load %arg5[%c1_78, %c0_79, %c0_80] : memref<8x2x10xf32, #tpu.memory_space<vmem>>, vector<1x2x10xf32>
    %108 = vector.shape_cast %107 : vector<1x2x10xf32> to vector<2x10xf32>
    %cst_81 = arith.constant dense<0.000000e+00> : vector<8x10xf32>
    %109 = tpu.matmul %21, %108, %cst_81 {dimension_numbers = #tpu.dot_dimension_numbers<[1], [0], [0], [1], [0, 0, 1, 1], [], []>} : vector<8x2xf32>, vector<2x10xf32>, vector<8x10xf32> -> vector<8x10xf32>
    %c1_82 = arith.constant 1 : index
    %c0_83 = arith.constant 0 : index
    %c0_84 = arith.constant 0 : index
    %110 = vector.load %arg6[%c1_82, %c0_83, %c0_84] : memref<8x10x10xf32, #tpu.memory_space<vmem>>, vector<1x10x10xf32>
    %111 = vector.shape_cast %110 : vector<1x10x10xf32> to vector<10x10xf32>
    %cst_85 = arith.constant dense<0.000000e+00> : vector<8x10xf32>
    %112 = tpu.matmul %90, %111, %cst_85 {dimension_numbers = #tpu.dot_dimension_numbers<[1], [0], [0], [1], [0, 0, 1, 1], [], []>} : vector<8x10xf32>, vector<10x10xf32>, vector<8x10xf32> -> vector<8x10xf32>
    %113 = arith.addf %109, %112 : vector<8x10xf32>
    %c1_86 = arith.constant 1 : index
    %c0_87 = arith.constant 0 : index
    %c0_88 = arith.constant 0 : index
    %114 = vector.load %arg7[%c1_86, %c0_87, %c0_88] : memref<8x1x10xf32, #tpu.memory_space<vmem>>, vector<1x1x10xf32>
    %115 = vector.shape_cast %114 : vector<1x1x10xf32> to vector<1x10xf32>
    %116 = vector.broadcast %115 : vector<1x10xf32> to vector<8x10xf32>
    %117 = arith.addf %113, %116 : vector<8x10xf32>
    %118 = arith.negf %117 : vector<8x10xf32>
    %119 = math.exp %118 : vector<8x10xf32>
    %cst_89 = arith.constant 1.000000e+00 : f32
    %120 = vector.broadcast %cst_89 : f32 to vector<8x10xf32>
    %121 = arith.addf %120, %119 : vector<8x10xf32>
    %122 = arith.divf %120, %121 : vector<8x10xf32>
    %c2_90 = arith.constant 2 : index
    %c0_91 = arith.constant 0 : index
    %c0_92 = arith.constant 0 : index
    %123 = vector.load %arg5[%c2_90, %c0_91, %c0_92] : memref<8x2x10xf32, #tpu.memory_space<vmem>>, vector<1x2x10xf32>
    %124 = vector.shape_cast %123 : vector<1x2x10xf32> to vector<2x10xf32>
    %cst_93 = arith.constant dense<0.000000e+00> : vector<8x10xf32>
    %125 = tpu.matmul %21, %124, %cst_93 {dimension_numbers = #tpu.dot_dimension_numbers<[1], [0], [0], [1], [0, 0, 1, 1], [], []>} : vector<8x2xf32>, vector<2x10xf32>, vector<8x10xf32> -> vector<8x10xf32>
    %c2_94 = arith.constant 2 : index
    %c0_95 = arith.constant 0 : index
    %c0_96 = arith.constant 0 : index
    %126 = vector.load %arg6[%c2_94, %c0_95, %c0_96] : memref<8x10x10xf32, #tpu.memory_space<vmem>>, vector<1x10x10xf32>
    %127 = vector.shape_cast %126 : vector<1x10x10xf32> to vector<10x10xf32>
    %cst_97 = arith.constant dense<0.000000e+00> : vector<8x10xf32>
    %128 = tpu.matmul %90, %127, %cst_97 {dimension_numbers = #tpu.dot_dimension_numbers<[1], [0], [0], [1], [0, 0, 1, 1], [], []>} : vector<8x10xf32>, vector<10x10xf32>, vector<8x10xf32> -> vector<8x10xf32>
    %129 = arith.addf %125, %128 : vector<8x10xf32>
    %c2_98 = arith.constant 2 : index
    %c0_99 = arith.constant 0 : index
    %c0_100 = arith.constant 0 : index
    %130 = vector.load %arg7[%c2_98, %c0_99, %c0_100] : memref<8x1x10xf32, #tpu.memory_space<vmem>>, vector<1x1x10xf32>
    %131 = vector.shape_cast %130 : vector<1x1x10xf32> to vector<1x10xf32>
    %132 = vector.broadcast %131 : vector<1x10xf32> to vector<8x10xf32>
    %133 = arith.addf %129, %132 : vector<8x10xf32>
    %134 = math.tanh %133 : vector<8x10xf32>
    %c3_101 = arith.constant 3 : index
    %c0_102 = arith.constant 0 : index
    %c0_103 = arith.constant 0 : index
    %135 = vector.load %arg5[%c3_101, %c0_102, %c0_103] : memref<8x2x10xf32, #tpu.memory_space<vmem>>, vector<1x2x10xf32>
    %136 = vector.shape_cast %135 : vector<1x2x10xf32> to vector<2x10xf32>
    %cst_104 = arith.constant dense<0.000000e+00> : vector<8x10xf32>
    %137 = tpu.matmul %21, %136, %cst_104 {dimension_numbers = #tpu.dot_dimension_numbers<[1], [0], [0], [1], [0, 0, 1, 1], [], []>} : vector<8x2xf32>, vector<2x10xf32>, vector<8x10xf32> -> vector<8x10xf32>
    %c3_105 = arith.constant 3 : index
    %c0_106 = arith.constant 0 : index
    %c0_107 = arith.constant 0 : index
    %138 = vector.load %arg6[%c3_105, %c0_106, %c0_107] : memref<8x10x10xf32, #tpu.memory_space<vmem>>, vector<1x10x10xf32>
    %139 = vector.shape_cast %138 : vector<1x10x10xf32> to vector<10x10xf32>
    %cst_108 = arith.constant dense<0.000000e+00> : vector<8x10xf32>
    %140 = tpu.matmul %90, %139, %cst_108 {dimension_numbers = #tpu.dot_dimension_numbers<[1], [0], [0], [1], [0, 0, 1, 1], [], []>} : vector<8x10xf32>, vector<10x10xf32>, vector<8x10xf32> -> vector<8x10xf32>
    %141 = arith.addf %137, %140 : vector<8x10xf32>
    %c3_109 = arith.constant 3 : index
    %c0_110 = arith.constant 0 : index
    %c0_111 = arith.constant 0 : index
    %142 = vector.load %arg7[%c3_109, %c0_110, %c0_111] : memref<8x1x10xf32, #tpu.memory_space<vmem>>, vector<1x1x10xf32>
    %143 = vector.shape_cast %142 : vector<1x1x10xf32> to vector<1x10xf32>
    %144 = vector.broadcast %143 : vector<1x10xf32> to vector<8x10xf32>
    %145 = arith.addf %141, %144 : vector<8x10xf32>
    %146 = arith.negf %145 : vector<8x10xf32>
    %147 = math.exp %146 : vector<8x10xf32>
    %cst_112 = arith.constant 1.000000e+00 : f32
    %148 = vector.broadcast %cst_112 : f32 to vector<8x10xf32>
    %149 = arith.addf %148, %147 : vector<8x10xf32>
    %150 = arith.divf %148, %149 : vector<8x10xf32>
    %151 = arith.mulf %122, %88 : vector<8x10xf32>
    %152 = arith.mulf %106, %134 : vector<8x10xf32>
    %153 = arith.addf %151, %152 : vector<8x10xf32>
    %154 = math.tanh %153 : vector<8x10xf32>
    %155 = arith.mulf %150, %154 : vector<8x10xf32>
    %c1_113 = arith.constant 1 : index
    %c0_114 = arith.constant 0 : index
    %c0_115 = arith.constant 0 : index
    %156 = vector.load %arg3[%c1_113, %c0_114, %c0_115] : memref<2x8x10xf32, #tpu.memory_space<vmem>>, vector<1x8x10xf32>
    %157 = vector.shape_cast %156 : vector<1x8x10xf32> to vector<8x10xf32>
    %c1_116 = arith.constant 1 : index
    %c0_117 = arith.constant 0 : index
    %c0_118 = arith.constant 0 : index
    %158 = vector.load %arg4[%c1_116, %c0_117, %c0_118] : memref<2x8x10xf32, #tpu.memory_space<vmem>>, vector<1x8x10xf32>
    %159 = vector.shape_cast %158 : vector<1x8x10xf32> to vector<8x10xf32>
    %c4 = arith.constant 4 : index
    %c0_119 = arith.constant 0 : index
    %c0_120 = arith.constant 0 : index
    %160 = vector.load %arg5[%c4, %c0_119, %c0_120] : memref<8x2x10xf32, #tpu.memory_space<vmem>>, vector<1x2x10xf32>
    %161 = vector.shape_cast %160 : vector<1x2x10xf32> to vector<2x10xf32>
    %cst_121 = arith.constant dense<0.000000e+00> : vector<8x10xf32>
    %162 = tpu.matmul %21, %161, %cst_121 {dimension_numbers = #tpu.dot_dimension_numbers<[1], [0], [0], [1], [0, 0, 1, 1], [], []>} : vector<8x2xf32>, vector<2x10xf32>, vector<8x10xf32> -> vector<8x10xf32>
    %c4_122 = arith.constant 4 : index
    %c0_123 = arith.constant 0 : index
    %c0_124 = arith.constant 0 : index
    %163 = vector.load %arg6[%c4_122, %c0_123, %c0_124] : memref<8x10x10xf32, #tpu.memory_space<vmem>>, vector<1x10x10xf32>
    %164 = vector.shape_cast %163 : vector<1x10x10xf32> to vector<10x10xf32>
    %cst_125 = arith.constant dense<0.000000e+00> : vector<8x10xf32>
    %165 = tpu.matmul %157, %164, %cst_125 {dimension_numbers = #tpu.dot_dimension_numbers<[1], [0], [0], [1], [0, 0, 1, 1], [], []>} : vector<8x10xf32>, vector<10x10xf32>, vector<8x10xf32> -> vector<8x10xf32>
    %166 = arith.addf %162, %165 : vector<8x10xf32>
    %c4_126 = arith.constant 4 : index
    %c0_127 = arith.constant 0 : index
    %c0_128 = arith.constant 0 : index
    %167 = vector.load %arg7[%c4_126, %c0_127, %c0_128] : memref<8x1x10xf32, #tpu.memory_space<vmem>>, vector<1x1x10xf32>
    %168 = vector.shape_cast %167 : vector<1x1x10xf32> to vector<1x10xf32>
    %169 = vector.broadcast %168 : vector<1x10xf32> to vector<8x10xf32>
    %170 = arith.addf %166, %169 : vector<8x10xf32>
    %171 = arith.negf %170 : vector<8x10xf32>
    %172 = math.exp %171 : vector<8x10xf32>
    %cst_129 = arith.constant 1.000000e+00 : f32
    %173 = vector.broadcast %cst_129 : f32 to vector<8x10xf32>
    %174 = arith.addf %173, %172 : vector<8x10xf32>
    %175 = arith.divf %173, %174 : vector<8x10xf32>
    %c5 = arith.constant 5 : index
    %c0_130 = arith.constant 0 : index
    %c0_131 = arith.constant 0 : index
    %176 = vector.load %arg5[%c5, %c0_130, %c0_131] : memref<8x2x10xf32, #tpu.memory_space<vmem>>, vector<1x2x10xf32>
    %177 = vector.shape_cast %176 : vector<1x2x10xf32> to vector<2x10xf32>
    %cst_132 = arith.constant dense<0.000000e+00> : vector<8x10xf32>
    %178 = tpu.matmul %21, %177, %cst_132 {dimension_numbers = #tpu.dot_dimension_numbers<[1], [0], [0], [1], [0, 0, 1, 1], [], []>} : vector<8x2xf32>, vector<2x10xf32>, vector<8x10xf32> -> vector<8x10xf32>
    %c5_133 = arith.constant 5 : index
    %c0_134 = arith.constant 0 : index
    %c0_135 = arith.constant 0 : index
    %179 = vector.load %arg6[%c5_133, %c0_134, %c0_135] : memref<8x10x10xf32, #tpu.memory_space<vmem>>, vector<1x10x10xf32>
    %180 = vector.shape_cast %179 : vector<1x10x10xf32> to vector<10x10xf32>
    %cst_136 = arith.constant dense<0.000000e+00> : vector<8x10xf32>
    %181 = tpu.matmul %157, %180, %cst_136 {dimension_numbers = #tpu.dot_dimension_numbers<[1], [0], [0], [1], [0, 0, 1, 1], [], []>} : vector<8x10xf32>, vector<10x10xf32>, vector<8x10xf32> -> vector<8x10xf32>
    %182 = arith.addf %178, %181 : vector<8x10xf32>
    %c5_137 = arith.constant 5 : index
    %c0_138 = arith.constant 0 : index
    %c0_139 = arith.constant 0 : index
    %183 = vector.load %arg7[%c5_137, %c0_138, %c0_139] : memref<8x1x10xf32, #tpu.memory_space<vmem>>, vector<1x1x10xf32>
    %184 = vector.shape_cast %183 : vector<1x1x10xf32> to vector<1x10xf32>
    %185 = vector.broadcast %184 : vector<1x10xf32> to vector<8x10xf32>
    %186 = arith.addf %182, %185 : vector<8x10xf32>
    %187 = arith.negf %186 : vector<8x10xf32>
    %188 = math.exp %187 : vector<8x10xf32>
    %cst_140 = arith.constant 1.000000e+00 : f32
    %189 = vector.broadcast %cst_140 : f32 to vector<8x10xf32>
    %190 = arith.addf %189, %188 : vector<8x10xf32>
    %191 = arith.divf %189, %190 : vector<8x10xf32>
    %c6 = arith.constant 6 : index
    %c0_141 = arith.constant 0 : index
    %c0_142 = arith.constant 0 : index
    %192 = vector.load %arg5[%c6, %c0_141, %c0_142] : memref<8x2x10xf32, #tpu.memory_space<vmem>>, vector<1x2x10xf32>
    %193 = vector.shape_cast %192 : vector<1x2x10xf32> to vector<2x10xf32>
    %cst_143 = arith.constant dense<0.000000e+00> : vector<8x10xf32>
    %194 = tpu.matmul %21, %193, %cst_143 {dimension_numbers = #tpu.dot_dimension_numbers<[1], [0], [0], [1], [0, 0, 1, 1], [], []>} : vector<8x2xf32>, vector<2x10xf32>, vector<8x10xf32> -> vector<8x10xf32>
    %c6_144 = arith.constant 6 : index
    %c0_145 = arith.constant 0 : index
    %c0_146 = arith.constant 0 : index
    %195 = vector.load %arg6[%c6_144, %c0_145, %c0_146] : memref<8x10x10xf32, #tpu.memory_space<vmem>>, vector<1x10x10xf32>
    %196 = vector.shape_cast %195 : vector<1x10x10xf32> to vector<10x10xf32>
    %cst_147 = arith.constant dense<0.000000e+00> : vector<8x10xf32>
    %197 = tpu.matmul %157, %196, %cst_147 {dimension_numbers = #tpu.dot_dimension_numbers<[1], [0], [0], [1], [0, 0, 1, 1], [], []>} : vector<8x10xf32>, vector<10x10xf32>, vector<8x10xf32> -> vector<8x10xf32>
    %198 = arith.addf %194, %197 : vector<8x10xf32>
    %c6_148 = arith.constant 6 : index
    %c0_149 = arith.constant 0 : index
    %c0_150 = arith.constant 0 : index
    %199 = vector.load %arg7[%c6_148, %c0_149, %c0_150] : memref<8x1x10xf32, #tpu.memory_space<vmem>>, vector<1x1x10xf32>
    %200 = vector.shape_cast %199 : vector<1x1x10xf32> to vector<1x10xf32>
    %201 = vector.broadcast %200 : vector<1x10xf32> to vector<8x10xf32>
    %202 = arith.addf %198, %201 : vector<8x10xf32>
    %203 = math.tanh %202 : vector<8x10xf32>
    %c7 = arith.constant 7 : index
    %c0_151 = arith.constant 0 : index
    %c0_152 = arith.constant 0 : index
    %204 = vector.load %arg5[%c7, %c0_151, %c0_152] : memref<8x2x10xf32, #tpu.memory_space<vmem>>, vector<1x2x10xf32>
    %205 = vector.shape_cast %204 : vector<1x2x10xf32> to vector<2x10xf32>
    %cst_153 = arith.constant dense<0.000000e+00> : vector<8x10xf32>
    %206 = tpu.matmul %21, %205, %cst_153 {dimension_numbers = #tpu.dot_dimension_numbers<[1], [0], [0], [1], [0, 0, 1, 1], [], []>} : vector<8x2xf32>, vector<2x10xf32>, vector<8x10xf32> -> vector<8x10xf32>
    %c7_154 = arith.constant 7 : index
    %c0_155 = arith.constant 0 : index
    %c0_156 = arith.constant 0 : index
    %207 = vector.load %arg6[%c7_154, %c0_155, %c0_156] : memref<8x10x10xf32, #tpu.memory_space<vmem>>, vector<1x10x10xf32>
    %208 = vector.shape_cast %207 : vector<1x10x10xf32> to vector<10x10xf32>
    %cst_157 = arith.constant dense<0.000000e+00> : vector<8x10xf32>
    %209 = tpu.matmul %157, %208, %cst_157 {dimension_numbers = #tpu.dot_dimension_numbers<[1], [0], [0], [1], [0, 0, 1, 1], [], []>} : vector<8x10xf32>, vector<10x10xf32>, vector<8x10xf32> -> vector<8x10xf32>
    %210 = arith.addf %206, %209 : vector<8x10xf32>
    %c7_158 = arith.constant 7 : index
    %c0_159 = arith.constant 0 : index
    %c0_160 = arith.constant 0 : index
    %211 = vector.load %arg7[%c7_158, %c0_159, %c0_160] : memref<8x1x10xf32, #tpu.memory_space<vmem>>, vector<1x1x10xf32>
    %212 = vector.shape_cast %211 : vector<1x1x10xf32> to vector<1x10xf32>
    %213 = vector.broadcast %212 : vector<1x10xf32> to vector<8x10xf32>
    %214 = arith.addf %210, %213 : vector<8x10xf32>
    %215 = arith.negf %214 : vector<8x10xf32>
    %216 = math.exp %215 : vector<8x10xf32>
    %cst_161 = arith.constant 1.000000e+00 : f32
    %217 = vector.broadcast %cst_161 : f32 to vector<8x10xf32>
    %218 = arith.addf %217, %216 : vector<8x10xf32>
    %219 = arith.divf %217, %218 : vector<8x10xf32>
    %220 = arith.mulf %191, %159 : vector<8x10xf32>
    %221 = arith.mulf %175, %203 : vector<8x10xf32>
    %222 = arith.addf %220, %221 : vector<8x10xf32>
    %223 = math.tanh %222 : vector<8x10xf32>
    %224 = arith.mulf %219, %223 : vector<8x10xf32>
    %c4_162 = arith.constant 4 : index
    %c0_163 = arith.constant 0 : index
    %c0_164 = arith.constant 0 : index
    %225 = vector.load %arg5[%c4_162, %c0_163, %c0_164] : memref<8x2x10xf32, #tpu.memory_space<vmem>>, vector<1x2x10xf32>
    %226 = vector.shape_cast %225 : vector<1x2x10xf32> to vector<2x10xf32>
    %cst_165 = arith.constant dense<0.000000e+00> : vector<8x10xf32>
    %227 = tpu.matmul %19, %226, %cst_165 {dimension_numbers = #tpu.dot_dimension_numbers<[1], [0], [0], [1], [0, 0, 1, 1], [], []>} : vector<8x2xf32>, vector<2x10xf32>, vector<8x10xf32> -> vector<8x10xf32>
    %c4_166 = arith.constant 4 : index
    %c0_167 = arith.constant 0 : index
    %c0_168 = arith.constant 0 : index
    %228 = vector.load %arg6[%c4_166, %c0_167, %c0_168] : memref<8x10x10xf32, #tpu.memory_space<vmem>>, vector<1x10x10xf32>
    %229 = vector.shape_cast %228 : vector<1x10x10xf32> to vector<10x10xf32>
    %cst_169 = arith.constant dense<0.000000e+00> : vector<8x10xf32>
    %230 = tpu.matmul %224, %229, %cst_169 {dimension_numbers = #tpu.dot_dimension_numbers<[1], [0], [0], [1], [0, 0, 1, 1], [], []>} : vector<8x10xf32>, vector<10x10xf32>, vector<8x10xf32> -> vector<8x10xf32>
    %231 = arith.addf %227, %230 : vector<8x10xf32>
    %c4_170 = arith.constant 4 : index
    %c0_171 = arith.constant 0 : index
    %c0_172 = arith.constant 0 : index
    %232 = vector.load %arg7[%c4_170, %c0_171, %c0_172] : memref<8x1x10xf32, #tpu.memory_space<vmem>>, vector<1x1x10xf32>
    %233 = vector.shape_cast %232 : vector<1x1x10xf32> to vector<1x10xf32>
    %234 = vector.broadcast %233 : vector<1x10xf32> to vector<8x10xf32>
    %235 = arith.addf %231, %234 : vector<8x10xf32>
    %236 = arith.negf %235 : vector<8x10xf32>
    %237 = math.exp %236 : vector<8x10xf32>
    %cst_173 = arith.constant 1.000000e+00 : f32
    %238 = vector.broadcast %cst_173 : f32 to vector<8x10xf32>
    %239 = arith.addf %238, %237 : vector<8x10xf32>
    %240 = arith.divf %238, %239 : vector<8x10xf32>
    %c5_174 = arith.constant 5 : index
    %c0_175 = arith.constant 0 : index
    %c0_176 = arith.constant 0 : index
    %241 = vector.load %arg5[%c5_174, %c0_175, %c0_176] : memref<8x2x10xf32, #tpu.memory_space<vmem>>, vector<1x2x10xf32>
    %242 = vector.shape_cast %241 : vector<1x2x10xf32> to vector<2x10xf32>
    %cst_177 = arith.constant dense<0.000000e+00> : vector<8x10xf32>
    %243 = tpu.matmul %19, %242, %cst_177 {dimension_numbers = #tpu.dot_dimension_numbers<[1], [0], [0], [1], [0, 0, 1, 1], [], []>} : vector<8x2xf32>, vector<2x10xf32>, vector<8x10xf32> -> vector<8x10xf32>
    %c5_178 = arith.constant 5 : index
    %c0_179 = arith.constant 0 : index
    %c0_180 = arith.constant 0 : index
    %244 = vector.load %arg6[%c5_178, %c0_179, %c0_180] : memref<8x10x10xf32, #tpu.memory_space<vmem>>, vector<1x10x10xf32>
    %245 = vector.shape_cast %244 : vector<1x10x10xf32> to vector<10x10xf32>
    %cst_181 = arith.constant dense<0.000000e+00> : vector<8x10xf32>
    %246 = tpu.matmul %224, %245, %cst_181 {dimension_numbers = #tpu.dot_dimension_numbers<[1], [0], [0], [1], [0, 0, 1, 1], [], []>} : vector<8x10xf32>, vector<10x10xf32>, vector<8x10xf32> -> vector<8x10xf32>
    %247 = arith.addf %243, %246 : vector<8x10xf32>
    %c5_182 = arith.constant 5 : index
    %c0_183 = arith.constant 0 : index
    %c0_184 = arith.constant 0 : index
    %248 = vector.load %arg7[%c5_182, %c0_183, %c0_184] : memref<8x1x10xf32, #tpu.memory_space<vmem>>, vector<1x1x10xf32>
    %249 = vector.shape_cast %248 : vector<1x1x10xf32> to vector<1x10xf32>
    %250 = vector.broadcast %249 : vector<1x10xf32> to vector<8x10xf32>
    %251 = arith.addf %247, %250 : vector<8x10xf32>
    %252 = arith.negf %251 : vector<8x10xf32>
    %253 = math.exp %252 : vector<8x10xf32>
    %cst_185 = arith.constant 1.000000e+00 : f32
    %254 = vector.broadcast %cst_185 : f32 to vector<8x10xf32>
    %255 = arith.addf %254, %253 : vector<8x10xf32>
    %256 = arith.divf %254, %255 : vector<8x10xf32>
    %c6_186 = arith.constant 6 : index
    %c0_187 = arith.constant 0 : index
    %c0_188 = arith.constant 0 : index
    %257 = vector.load %arg5[%c6_186, %c0_187, %c0_188] : memref<8x2x10xf32, #tpu.memory_space<vmem>>, vector<1x2x10xf32>
    %258 = vector.shape_cast %257 : vector<1x2x10xf32> to vector<2x10xf32>
    %cst_189 = arith.constant dense<0.000000e+00> : vector<8x10xf32>
    %259 = tpu.matmul %19, %258, %cst_189 {dimension_numbers = #tpu.dot_dimension_numbers<[1], [0], [0], [1], [0, 0, 1, 1], [], []>} : vector<8x2xf32>, vector<2x10xf32>, vector<8x10xf32> -> vector<8x10xf32>
    %c6_190 = arith.constant 6 : index
    %c0_191 = arith.constant 0 : index
    %c0_192 = arith.constant 0 : index
    %260 = vector.load %arg6[%c6_190, %c0_191, %c0_192] : memref<8x10x10xf32, #tpu.memory_space<vmem>>, vector<1x10x10xf32>
    %261 = vector.shape_cast %260 : vector<1x10x10xf32> to vector<10x10xf32>
    %cst_193 = arith.constant dense<0.000000e+00> : vector<8x10xf32>
    %262 = tpu.matmul %224, %261, %cst_193 {dimension_numbers = #tpu.dot_dimension_numbers<[1], [0], [0], [1], [0, 0, 1, 1], [], []>} : vector<8x10xf32>, vector<10x10xf32>, vector<8x10xf32> -> vector<8x10xf32>
    %263 = arith.addf %259, %262 : vector<8x10xf32>
    %c6_194 = arith.constant 6 : index
    %c0_195 = arith.constant 0 : index
    %c0_196 = arith.constant 0 : index
    %264 = vector.load %arg7[%c6_194, %c0_195, %c0_196] : memref<8x1x10xf32, #tpu.memory_space<vmem>>, vector<1x1x10xf32>
    %265 = vector.shape_cast %264 : vector<1x1x10xf32> to vector<1x10xf32>
    %266 = vector.broadcast %265 : vector<1x10xf32> to vector<8x10xf32>
    %267 = arith.addf %263, %266 : vector<8x10xf32>
    %268 = math.tanh %267 : vector<8x10xf32>
    %c7_197 = arith.constant 7 : index
    %c0_198 = arith.constant 0 : index
    %c0_199 = arith.constant 0 : index
    %269 = vector.load %arg5[%c7_197, %c0_198, %c0_199] : memref<8x2x10xf32, #tpu.memory_space<vmem>>, vector<1x2x10xf32>
    %270 = vector.shape_cast %269 : vector<1x2x10xf32> to vector<2x10xf32>
    %cst_200 = arith.constant dense<0.000000e+00> : vector<8x10xf32>
    %271 = tpu.matmul %19, %270, %cst_200 {dimension_numbers = #tpu.dot_dimension_numbers<[1], [0], [0], [1], [0, 0, 1, 1], [], []>} : vector<8x2xf32>, vector<2x10xf32>, vector<8x10xf32> -> vector<8x10xf32>
    %c7_201 = arith.constant 7 : index
    %c0_202 = arith.constant 0 : index
    %c0_203 = arith.constant 0 : index
    %272 = vector.load %arg6[%c7_201, %c0_202, %c0_203] : memref<8x10x10xf32, #tpu.memory_space<vmem>>, vector<1x10x10xf32>
    %273 = vector.shape_cast %272 : vector<1x10x10xf32> to vector<10x10xf32>
    %cst_204 = arith.constant dense<0.000000e+00> : vector<8x10xf32>
    %274 = tpu.matmul %224, %273, %cst_204 {dimension_numbers = #tpu.dot_dimension_numbers<[1], [0], [0], [1], [0, 0, 1, 1], [], []>} : vector<8x10xf32>, vector<10x10xf32>, vector<8x10xf32> -> vector<8x10xf32>
    %275 = arith.addf %271, %274 : vector<8x10xf32>
    %c7_205 = arith.constant 7 : index
    %c0_206 = arith.constant 0 : index
    %c0_207 = arith.constant 0 : index
    %276 = vector.load %arg7[%c7_205, %c0_206, %c0_207] : memref<8x1x10xf32, #tpu.memory_space<vmem>>, vector<1x1x10xf32>
    %277 = vector.shape_cast %276 : vector<1x1x10xf32> to vector<1x10xf32>
    %278 = vector.broadcast %277 : vector<1x10xf32> to vector<8x10xf32>
    %279 = arith.addf %275, %278 : vector<8x10xf32>
    %280 = arith.negf %279 : vector<8x10xf32>
    %281 = math.exp %280 : vector<8x10xf32>
    %cst_208 = arith.constant 1.000000e+00 : f32
    %282 = vector.broadcast %cst_208 : f32 to vector<8x10xf32>
    %283 = arith.addf %282, %281 : vector<8x10xf32>
    %284 = arith.divf %282, %283 : vector<8x10xf32>
    %285 = arith.mulf %256, %222 : vector<8x10xf32>
    %286 = arith.mulf %240, %268 : vector<8x10xf32>
    %287 = arith.addf %285, %286 : vector<8x10xf32>
    %288 = math.tanh %287 : vector<8x10xf32>
    %289 = arith.mulf %284, %288 : vector<8x10xf32>
    %290 = arith.addf %90, %155 : vector<8x10xf32>
    %291 = arith.addf %289, %224 : vector<8x10xf32>
    %c0_209 = arith.constant 0 : index
    %c0_210 = arith.constant 0 : index
    %c0_211 = arith.constant 0 : index
    %292 = vector.load %arg9[%c0_209, %c0_210, %c0_211] : memref<2x10x20xf32, #tpu.memory_space<vmem>>, vector<1x10x20xf32>
    %293 = vector.shape_cast %292 : vector<1x10x20xf32> to vector<10x20xf32>
    %cst_212 = arith.constant dense<0.000000e+00> : vector<8x20xf32>
    %294 = tpu.matmul %290, %293, %cst_212 {dimension_numbers = #tpu.dot_dimension_numbers<[1], [0], [0], [1], [0, 0, 1, 1], [], []>} : vector<8x10xf32>, vector<10x20xf32>, vector<8x20xf32> -> vector<8x20xf32>
    %295 = arith.addf %17, %294 : vector<8x20xf32>
    %c1_213 = arith.constant 1 : index
    %c0_214 = arith.constant 0 : index
    %c0_215 = arith.constant 0 : index
    %296 = vector.load %arg9[%c1_213, %c0_214, %c0_215] : memref<2x10x20xf32, #tpu.memory_space<vmem>>, vector<1x10x20xf32>
    %297 = vector.shape_cast %296 : vector<1x10x20xf32> to vector<10x20xf32>
    %cst_216 = arith.constant dense<0.000000e+00> : vector<8x20xf32>
    %298 = tpu.matmul %291, %297, %cst_216 {dimension_numbers = #tpu.dot_dimension_numbers<[1], [0], [0], [1], [0, 0, 1, 1], [], []>} : vector<8x10xf32>, vector<10x20xf32>, vector<8x20xf32> -> vector<8x20xf32>
    %299 = arith.addf %295, %298 : vector<8x20xf32>
    %c0_217 = arith.constant 0 : index
    %c0_218 = arith.constant 0 : index
    %300 = vector.load %arg10[%c0_217, %c0_218] : memref<1x20xf32, #tpu.memory_space<vmem>>, vector<1x20xf32>
    %301 = vector.broadcast %300 : vector<1x20xf32> to vector<8x20xf32>
    %302 = arith.addf %299, %301 : vector<8x20xf32>
    %303 = math.tanh %302 : vector<8x20xf32>
    %c0_219 = arith.constant 0 : index
    %c0_220 = arith.constant 0 : index
    %304 = vector.load %arg11[%c0_219, %c0_220] : memref<20x1xf32, #tpu.memory_space<vmem>>, vector<20x1xf32>
    %cst_221 = arith.constant dense<0.000000e+00> : vector<8x1xf32>
    %305 = tpu.matmul %303, %304, %cst_221 {dimension_numbers = #tpu.dot_dimension_numbers<[1], [0], [0], [1], [0, 0, 1, 1], [], []>} : vector<8x20xf32>, vector<20x1xf32>, vector<8x1xf32> -> vector<8x1xf32>
    %c0_222 = arith.constant 0 : index
    %c0_223 = arith.constant 0 : index
    %306 = vector.load %arg12[%c0_222, %c0_223] : memref<1x1xf32, #tpu.memory_space<vmem>>, vector<1x1xf32>
    %307 = vector.broadcast %306 : vector<1x1xf32> to vector<8x1xf32>
    %308 = arith.addf %305, %307 : vector<8x1xf32>
    %309 = arith.negf %308 : vector<8x1xf32>
    %310 = math.exp %309 : vector<8x1xf32>
    %cst_224 = arith.constant 1.000000e+00 : f32
    %311 = vector.broadcast %cst_224 : f32 to vector<8x1xf32>
    %312 = arith.addf %311, %310 : vector<8x1xf32>
    %313 = arith.divf %311, %312 : vector<8x1xf32>
    %c0_225 = arith.constant 0 : index
    %c0_226 = arith.constant 0 : index
    %314 = vector.load %arg13[%c0_225, %c0_226] : memref<8x1xf32, #tpu.memory_space<vmem>>, vector<8x1xf32>
    tpu.vector_store %arg13[%c0_225, %c0_226], %313 {strides = array<i32>} : memref<8x1xf32, #tpu.memory_space<vmem>>, vector<8x1xf32>,
    return
  }
}

</mosaic_0001>

<bundles_post_ra>
// kernel: tpu_custom_call.1
= control target key start
LH: loop header
LB: loop body
LE: loop exit
PB: predicated region body
PF: predicated region fallthrough
CT: control target
= control target key end

     0   :  { %vm155_vm0 = vcmask 1041408   ;;  %vm179_vm1 = vcmask 15360   ;;  %v1550_v3 = vmov 0   ;;  %vm151_vm2 = vcmask 80896   ;;  %s2107_s6 = inlined_call_operand.vmem [shape: f32[8,10,10], index: 6, kind: input, shape index: {}]   ;;  %s2108_s5 = inlined_call_operand.vmem [shape: f32[8,2,10], index: 5, kind: input, shape index: {}]   ;;  %s2109_s3 = inlined_call_operand.vmem [shape: f32[2,8,10], index: 3, kind: input, shape index: {}]   ;;  %s2110_s2 = inlined_call_operand.vmem [shape: f32[2,8,2], index: 2, kind: input, shape index: {}]   ;;  %s2111_s0 = inlined_call_operand.vmem [shape: s32[8,1], index: 0, kind: input, shape index: {}]   ;;  %s2112_s7 = inlined_call_operand.vmem [shape: f32[8,1,10], index: 7, kind: input, shape index: {}]   ;;  %s2113_s1 = inlined_call_operand.vmem [shape: s32[8,1], index: 1, kind: input, shape index: {}]   ;;  %s2114_s8 = inlined_call_operand.vmem [shape: f32[2,100,20], index: 8, kind: input, shape index: {}]   ;;  %s2115_s4 = inlined_call_operand.vmem [shape: f32[2,8,10], index: 4, kind: input, shape index: {}]   ;;  %s2116_s9 = inlined_call_operand.vmem [shape: f32[2,10,20], index: 9, kind: input, shape index: {}]   ;;  %s2117_s10 = inlined_call_operand.vmem [shape: f32[1,20], index: 10, kind: input, shape index: {}]   ;;  %s2118_s11 = inlined_call_operand.vmem [shape: f32[20,1], index: 11, kind: input, shape index: {}]   ;;  %s2119_s12 = inlined_call_operand.<no memory space> [shape: f32[1,1], index: 12, kind: input, shape index: {}]   ;;  %s2120_s13 = inlined_call_operand.vmem [shape: f32[8,1], index: 13, kind: output, shape index: {}]  }
   0x1   :  { %v1625_v0 = vld [vmem:[%s2107_s6 + $0x8] sm:$0x3]  ;;  %v1630_v1 = vld [vmem:[%s2107_s6] sm:$0xff]  ;;  %1469 = vset.pattern.permute.xlu0 %v1550_v3  ;;  %v1359_v6 = vld [vmem:[%s2107_s6 + $0x18] sm:$0x3]  ;;  %vm93_vm3 = vcmask 1043456   ;;  %v46_v49 = vlaneseq }
   0x2   :  { %v1635_v2 = vld [vmem:[%s2108_s5] sm:$0x3]  ;;  %1352 = vmatpush.msk.msra.mxu2 %vm155_vm0, %v1625_v0  ;;  %v1357_v7 = vld [vmem:[%s2108_s5 + $0x2] sm:$0x3]  ;;  %v1358_v8 = vld [vmem:[%s2107_s6 + $0x10] sm:$0xff]  ;;  %v1551_v63 = vmov 0.0  }
   0x3   :  { %1354 = vmatpush.msk.msra.mxu3 %vm155_vm0, %v1635_v2  ;;  %v146_v4 = vld [vmem:[%s2109_s3] sm:$0xff]  ;;  %v1665_v9 = vld [vmem:[%s2107_s6 + $0x28] sm:$0x3]  ;;  %v1376_v13 = vld [vmem:[%s2107_s6 + $0x38] sm:$0x3]  ;;  %v47_v54 = vand.u32 127, %v46_v49 }
   0x4   :  { %v1647_v5 = vld [vmem:[%s2110_s2] sm:$0xff]  ;;  %174 = vmatpush.msra.mxu2 %v1630_v1  ;;  %v1375_v15 = vld [vmem:[%s2107_s6 + $0x30] sm:$0xff]  ;;  %v1346_v17 = vld [vmem:[%s2114_s8 + $0xc8] sm:$0xf]  ;;  %vm89_vm6 = vcmask 818176  }
   0x5   :  { %1355 = vmatmul.msk.f32.vlgmr.msra.gmra.mxu3 %vm179_vm1, %v1647_v5  ;;  %v1670_v10 = vld [vmem:[%s2108_s5 + $0x4] sm:$0x3]  ;;  %1353 = vmatmul.msk.f32.vlgmr.msra.gmra.mxu2 %vm151_vm2, %v146_v4  ;;  %v1374_v14 = vld [vmem:[%s2108_s5 + $0x6] sm:$0x3]  ;;  %v74_v18 = vld [vmem:[%s2114_s8 + $0x60] sm:$0xf] }
   0x6   :  { %1360 = vmatpush.msk.msrb.mxu3 %vm155_vm0, %v1359_v6  ;;  %1362 = vmatpush.msk.msrb.mxu2 %vm155_vm0, %v1357_v7  ;;  %v1677_v11 = vld [vmem:[%s2107_s6 + $0x20] sm:$0xff]  ;;  %v73_v20 = vld [vmem:[%s2114_s8 + $0x58] sm:$0xff]  ;;  %v72_v22 = vld [vmem:[%s2114_s8 + $0x50] sm:$0xff] }
   0x7   :  { %v48_v12 = vld [vmem:[%s2111_s0] sm:$0xff]  ;;  %1347 = vmatpush.msk.msra.mxu0 %vm93_vm3, %v1346_v17  ;;  %1349 = vmatpush.msk.msra.mxu1 %vm93_vm3, %v74_v18  ;;  %v1344_v21 = vld [vmem:[%s2114_s8 + $0xb8] sm:$0xff]  ;;  %v1343_v23 = vld [vmem:[%s2114_s8 + $0xb0] sm:$0xff] }
   0x8   :  { %253 = vmatpush.msrb.mxu3 %v1358_v8  ;;  %1371 = vmatpush.msk.msra.mxu2 %vm155_vm0, %v1670_v10  ;;  %v55_v16 = vld [vmem:[%s2113_s1] sm:$0xff]  ;;  %v71_v24 = vld [vmem:[%s2114_s8 + $0x48] sm:$0xff]  ;;  %v69_v32 = vld [vmem:[%s2114_s8 + $0x38] sm:$0xff] }
   0x9   :  { %50 = vperm.xlu0 %1469, %v48_v12   ;;  %v1345_v19 = vld [vmem:[%s2114_s8 + $0xc0] sm:$0xff]  ;;  %127 = vmatpush.msra.mxu1 %v73_v20  ;;  %v1342_v27 = vld [vmem:[%s2114_s8 + $0xa8] sm:$0xff]  ;;  %v1340_v34 = vld [vmem:[%s2114_s8 + $0x98] sm:$0xff] }
   0xa   :  { %1369 = vmatpush.msk.msra.mxu3 %vm155_vm0, %v1665_v9  ;;  %101 = vmatpush.msra.mxu0 %v1345_v19  ;;  %v1743_v26 = vld [vmem:[%s2112_s7] ss:$0 sm:$0xff]  ;;  %v68_v35 = vld [vmem:[%s2114_s8 + $0x30] sm:$0xff]  ;;  %v67_v38 = vld [vmem:[%s2114_s8 + $0x28] sm:$0xff] }
   0xb   :  { %128 = vmatpush.msra.mxu1 %v72_v22  ;;  %v70_v28 = vld [vmem:[%s2114_s8 + $0x40] sm:$0xff]  ;;  %v1339_v37 = vld [vmem:[%s2114_s8 + $0x90] sm:$0xff]  ;;  %v1338_v42 = vld [vmem:[%s2114_s8 + $0x88] sm:$0xff] }
   0xc   :  { %329 = vmatpush.msra.mxu3 %v1677_v11  ;;  %102 = vmatpush.msra.mxu0 %v1344_v21  ;;  %v1341_v31 = vld [vmem:[%s2114_s8 + $0xa0] sm:$0xff]  ;;  %v65_v47 = vld [vmem:[%s2114_s8 + $0x18] sm:$0xff]  ;;  %v64_v51 = vld [vmem:[%s2114_s8 + $0x10] sm:$0xff] }
   0xd   :  { %1361 = vmatmul.msk.f32.vlgmr.msrb.gmra.mxu3 %vm151_vm2, %v146_v4  ;;  %1363 = vmatmul.msk.f32.vlgmr.msrb.gmra.mxu2 %vm179_vm1, %v1647_v5  ;;  %v1773_v41 = vld [vmem:[%s2112_s7 + $0x1] ss:$0 sm:$0xff]  ;;  %v1336_v50 = vld [vmem:[%s2114_s8 + $0x78] sm:$0xff]  ;;  %v1335_v55 = vld [vmem:[%s2114_s8 + $0x70] sm:$0xff] }
   0xe   :  { %1377 = vmatpush.msk.msrb.mxu3 %vm155_vm0, %v1376_v13  ;;  %1379 = vmatpush.msk.msrb.mxu2 %vm155_vm0, %v1374_v14  ;;  %v66_v43 = vld [vmem:[%s2114_s8 + $0x20] sm:$0xff]  ;;  %v63_v56 = vld [vmem:[%s2114_s8 + $0x8] sm:$0xff] }
   0xf   :  { %103 = vmatpush.msra.mxu0 %v1343_v23  ;;  %129 = vmatpush.msra.mxu1 %v71_v24  ;;  %v1337_v46 = vld [vmem:[%s2114_s8 + $0x80] sm:$0xff]  ;;  %v1334_v60 = vld [vmem:[%s2114_s8 + $0x68] sm:$0xff] }
  0x10   :  { %387 = vmatpush.msrb.mxu3 %v1375_v15  ;;  %v62_v61 = vld [vmem:[%s2114_s8] sm:$0xff] }
  0x11   :  { %57 = vperm.xlu0 %1469, %v55_v16   ;;  %104 = vmatpush.msra.mxu0 %v1342_v27 }
  0x12   :  { %130 = vmatpush.msra.mxu1 %v70_v28  ;;  %v1413_v28 = vld [vmem:[%s2108_s5 + $0xa] sm:$0x3] }
  0x13   :  { %105 = vmatpush.msra.mxu0 %v1341_v31 }
  0x14   :  { %131 = vmatpush.msra.mxu1 %v69_v32 }
  0x15   :  { %1370 = vmatmul.msk.f32.vlgmr.msra.gmra.mxu3 %vm151_vm2, %v146_v4  ;;  %1372 = vmatmul.msk.f32.vlgmr.msra.gmra.mxu2 %vm179_vm1, %v1647_v5 }
  0x16   :  { %1388 = vmatpush.msk.msra.mxu3 %vm155_vm0, %v1359_v6  ;;  %1390 = vmatpush.msk.msra.mxu2 %vm155_vm0, %v1357_v7 }
  0x17   :  { %106 = vmatpush.msra.mxu0 %v1340_v34  ;;  %132 = vmatpush.msra.mxu1 %v68_v35 }
  0x18   :  { %526 = vmatpush.msra.mxu3 %v1358_v8 }
  0x19   :  { %107 = vmatpush.msra.mxu0 %v1339_v37  ;;  %133 = vmatpush.msra.mxu1 %v67_v38  ;;  %v147_v37 = vld [vmem:[%s2115_s4] sm:$0xff] }
  0x1b   :  { %108 = vmatpush.msra.mxu0 %v1338_v42  ;;  %134 = vmatpush.msra.mxu1 %v66_v43 }
  0x1d   :  { %1378 = vmatmul.msk.f32.vlgmr.msrb.gmra.mxu3 %vm151_vm2, %v146_v4  ;;  %1380 = vmatmul.msk.f32.vlgmr.msrb.gmra.mxu2 %vm179_vm1, %v1647_v5 }
  0x1e   :  { %1397 = vmatpush.msk.msrb.mxu3 %vm155_vm0, %v1376_v13  ;;  %1399 = vmatpush.msk.msrb.mxu2 %vm155_vm0, %v1374_v14 }
  0x1f   :  { %109 = vmatpush.msra.mxu0 %v1337_v46  ;;  %135 = vmatpush.msra.mxu1 %v65_v47 }
  0x20   :  { %628 = vmatpush.msrb.mxu3 %v1375_v15  ;;  %v1838_v15 = vld [vmem:[%s2112_s7 + $0x2] ss:$0 sm:$0xff] }
  0x21   :  { %110 = vmatpush.msra.mxu0 %v1336_v50  ;;  %136 = vmatpush.msra.mxu1 %v64_v51 }
  0x23   :  { %111 = vmatpush.msra.mxu0 %v1335_v55  ;;  %137 = vmatpush.msra.mxu1 %v63_v56 }
  0x25   :  { %112 = vmatpush.msra.mxu0 %v1334_v60  ;;  %138 = vmatpush.msra.mxu1 %v62_v61  ;;  %v1415_v61 = vld [vmem:[%s2107_s6 + $0x58] sm:$0x3] }
  0x27   :  { %1383 = vmatpush.msk.msrb.mxu0 %vm155_vm0, %v1625_v0  ;;  %1385 = vmatpush.msk.msrb.mxu1 %vm155_vm0, %v1635_v2  ;;  %v1823_v2 = vld [vmem:[%s2112_s7 + $0x3] ss:$0 sm:$0xff] }
  0x29   :  { %463 = vmatpush.msrb.mxu0 %v1630_v1 }
  0x7b   :  { %v51_v40 = vpop.permute.xlu0 %50 }
  0x7c   :  { %vm52_vm4 = vcmp.eq.s32.totalorder %v47_v54, %v51_v40 }
  0x7d   :  { %v1332_v3 = vsel %vm52_vm4, 1.0, %v1551_v63 }
  0x7e   :  { %1350 = vmatmul.msk.f32.vlgmr.msra.gmra.mxu1 %vm89_vm6, %v1332_v3  ;;  %v1405_v3 = vld [vmem:[%s2107_s6 + $0x40] sm:$0xff] }
  0x7f   :  { %1395 = vmatpush.msk.msra.mxu1 %vm155_vm0, %v1670_v10 }
  0x83   :  { %v58_v59 = vpop.permute.xlu0 %57 }
  0x84   :  { %vm59_vm5 = vcmp.eq.s32.totalorder %v47_v54, %v58_v59  ;;  %v1422_v54 = vld [vmem:[%s2108_s5 + $0xc] sm:$0x3] }
  0x85   :  { %v1333_v4 = vsel %vm59_vm5, 1.0, %v1551_v63  ;;  %v1414_v63 = vld [vmem:[%s2107_s6 + $0x50] sm:$0xff] }
  0x86   :  { %1348 = vmatmul.msk.f32.vlgmr.msra.gmra.mxu0 %vm89_vm6, %v1333_v4  ;;  %v1432_v4 = vld [vmem:[%s2107_s6 + $0x78] sm:$0x3] }
  0x87   :  { %1393 = vmatpush.msk.msra.mxu0 %vm155_vm0, %v1665_v9  ;;  %v1829_v9 = vld [vmem:[%s2110_s2 + $0x8] sm:$0xff] }
  0x88   :  { %v203_v25 = vpop.f32.mrf.mxu3  ;;  %v176_v29 = vpop.f32.mrf.mxu2  ;;  %1386 = vmatmul.msk.f32.vlgmr.msrb.gmra.mxu1 %vm179_vm1, %v1829_v9  ;;  %1391 = vmatmul.msk.f32.vlgmr.msra.gmra.mxu2 %vm179_vm1, %v1829_v9 }
  0x89   :  { %v204_v30 = vadd.f32 %v203_v25, %v176_v29  ;;  %586 = vmatpush.msra.mxu0 %v1677_v11  ;;  %1418 = vmatpush.msk.msra.mxu2 %vm155_vm0, %v1413_v28 }
  0x8b   :  { %v210_v33 = vadd.f32 %v1743_v26, %v204_v30  ;;  %v1404_v30 = vld [vmem:[%s2108_s5 + $0x8] sm:$0x3] }
  0x8c   :  { %1409 = vmatpush.msk.msrb.mxu1 %vm155_vm0, %v1404_v30 }
  0x8d   :  { %v1356_v36 = vmul.f32 -1.442695, %v210_v33 }
  0x8f   :  { %1480 = vpow2.f32 %v1356_v36 }
  0x90   :  { %v255_v39 = vpop.f32.mrf.mxu3  ;;  %v278_v44 = vpop.f32.mrf.mxu2  ;;  %1396 = vmatmul.msk.f32.vlgmr.msra.gmra.mxu1 %vm179_vm1, %v1829_v9  ;;  %1400 = vmatmul.msk.f32.vlgmr.msrb.gmra.mxu2 %vm179_vm1, %v1829_v9 }
  0x91   :  { %v279_v45 = vadd.f32 %v278_v44, %v255_v39  ;;  %1427 = vmatpush.msk.msra.mxu1 %vm155_vm0, %v1422_v54 }
  0x93   :  { %v286_v48 = vadd.f32 %v1773_v41, %v279_v45  ;;  %v1430_v45 = vld [vmem:[%s2108_s5 + $0xe] sm:$0x3] }
  0x94   :  { %1435 = vmatpush.msk.msrb.mxu2 %vm155_vm0, %v1430_v45 }
  0x95   :  { %v1481_v52 = vpop.eup %1480  ;;  %v1365_v53 = vmul.f32 -1.442695, %v286_v48 }
  0x96   :  { %v1800_v57 = vadd.f32 1.0, %v1481_v52 }
  0x97   :  { %1482 = vpow2.f32 %v1365_v53 }
  0x98   :  { %v331_v58 = vpop.f32.mrf.mxu3  ;;  %1484 = vrcp.f32 %v1800_v57  ;;  %v354_v62 = vpop.f32.mrf.mxu2  ;;  %v226_v25 = vand.u32 2147483648, %v1800_v57  ;;  %vm220_vm9 = vweird.f32 %v1800_v57  ;;  %v224_v29 = vand.u32 2147483647, %v1800_v57  ;;  %1410 = vmatmul.msk.f32.vlgmr.msrb.gmra.mxu1 %vm179_vm1, %v1829_v9  ;;  %1419 = vmatmul.msk.f32.vlgmr.msra.gmra.mxu2 %vm179_vm1, %v1829_v9 }
  0x99   :  { %v355_v11 = vadd.f32 %v354_v62, %v331_v58  ;;  %1446 = vmatpush.msk.msra.mxu2 %vm155_vm0, %v1413_v28  ;;  %1441 = vmatpush.msk.msrb.mxu1 %vm155_vm0, %v1404_v30  ;;  %v1406_v62 = vld [vmem:[%s2107_s6 + $0x48] sm:$0x3] }
  0x9a   :  { %v227_v38 = vor.u32 1.1754944e-38, %v226_v25  ;;  %vm225_vm14 = vcmp.eq.f32.partialorder %v224_v29, 8.507059e+37 }
  0x9b   :  { %v362_v21 = vadd.f32 %v1838_v15, %v355_v11 }
  0x9d   :  { %v1483_v6 = vpop.eup %1482 }
  0x9e   :  { %v1485_v7 = vpop.eup %1484  ;;  %v290_v8 = vadd.f32 1.0, %v1483_v6  ;;  %v1424_v6 = vld [vmem:[%s2107_s6 + $0x68] sm:$0x3] }
  0x9f   :  { %v216_v0 = vmul.f32 %v1485_v7, %v1800_v57  ;;  %vm221_vm7 = vweird.f32 %v1485_v7 }
  0xa0   :  { %v389_v12 = vpop.f32.mrf.mxu3  ;;  %1486 = vrcp.f32 %v290_v8  ;;  %v412_v1 = vpop.f32.mrf.mxu2  ;;  %v302_v22 = vand.u32 2147483648, %v290_v8  ;;  %v300_v27 = vand.u32 2147483647, %v290_v8  ;;  %vm296_vm10 = vweird.f32 %v290_v8  ;;  %vm1854_vm11 = vmor %vm220_vm9, %vm221_vm7  ;;  %1436 = vmatmul.msk.f32.vlgmr.msrb.gmra.mxu2 %vm179_vm1, %v1829_v9  ;;  %1428 = vmatmul.msk.f32.vlgmr.msra.gmra.mxu1 %vm179_vm1, %v1829_v9 }
  0xa1   :  { %v413_v13 = vadd.f32 %v412_v1, %v389_v12  ;;  %v217_v10 = vsub.f32 1.0, %v216_v0  ;;  %1455 = vmatpush.msk.msrb.mxu2 %vm155_vm0, %v1430_v45  ;;  %1451 = vmatpush.msk.msra.mxu1 %vm155_vm0, %v1422_v54  ;;  %v1402_v12 = vld [vmem:[%s2109_s3 + $0x8] sm:$0xff]  ;;  %v1972_v45 = vld [vmem:[%s2112_s7 + $0x7] ss:$0 sm:$0xff] }
  0xa2   :  { %v303_v34 = vor.u32 1.1754944e-38, %v302_v22  ;;  %vm301_vm13 = vcmp.eq.f32.partialorder %v300_v27, 8.507059e+37  ;;  %v1955_v27 = vld [vmem:[%s2112_s7 + $0x4] ss:$0 sm:$0xff] }
  0xa3   :  { %v420_v14 = vadd.f32 %v1823_v2, %v413_v13  ;;  %v218_v18 = vmul.f32 %v1485_v7, %v217_v10 }
  0xa5   :  { %v1382_v16 = vmul.f32 -1.442695, %v420_v14  ;;  %v219_v23 = vadd.f32 %v1485_v7, %v218_v18 }
  0xa6   :  { %v1487_v17 = vpop.eup %1486 }
  0xa7   :  { %v292_v19 = vmul.f32 %v1487_v17, %v290_v8  ;;  %1488 = vpow2.f32 %v1382_v16  ;;  %vm297_vm8 = vweird.f32 %v1487_v17  ;;  %v223_v35 = vsel %vm1854_vm11, %v1485_v7, %v219_v23  ;;  %v1431_v7 = vld [vmem:[%s2107_s6 + $0x70] sm:$0xff]  ;;  %v1423_v8 = vld [vmem:[%s2107_s6 + $0x60] sm:$0xff] }
  0xa8   :  { %1490 = vtanh.f32 %v362_v21  ;;  %vm298_vm12 = vmor %vm296_vm10, %vm297_vm8  ;;  %v228_v42 = vsel %vm225_vm14, %v227_v38, %v223_v35  ;;  %1442 = vmatmul.msk.f32.vlgmr.msrb.gmra.mxu1 %vm179_vm1, %v1647_v5  ;;  %1447 = vmatmul.msk.f32.vlgmr.msra.gmra.mxu2 %vm179_vm1, %v1647_v5 }
  0xa9   :  { %v293_v20 = vsub.f32 1.0, %v292_v19 }
  0xab   :  { %v294_v24 = vmul.f32 %v1487_v17, %v293_v20 }
  0xad   :  { %v1489_v31 = vpop.eup %1488  ;;  %v295_v33 = vadd.f32 %v1487_v17, %v294_v24 }
  0xae   :  { %v424_v36 = vadd.f32 1.0, %v1489_v31  ;;  %v1491_v44 = vpop.eup %1490 }
  0xaf   :  { %v299_v39 = vsel %vm298_vm12, %v1487_v17, %v295_v33  ;;  %v441_v46 = vmul.f32 %v1491_v44, %v228_v42 }
  0xb0   :  { %v304_v40 = vsel %vm301_vm13, %v303_v34, %v299_v39  ;;  %1492 = vrcp.f32 %v424_v36  ;;  %v436_v51 = vand.u32 2147483648, %v424_v36  ;;  %v434_v53 = vand.u32 2147483647, %v424_v36  ;;  %1452 = vmatmul.msk.f32.vlgmr.msra.gmra.mxu1 %vm179_vm1, %v1647_v5  ;;  %1456 = vmatmul.msk.f32.vlgmr.msrb.gmra.mxu2 %vm179_vm1, %v1647_v5 }
  0xb1   :  { %v440_v43 = vmul.f32 %v304_v40, %v147_v37  ;;  %vm430_vm4 = vweird.f32 %v424_v36 }
  0xb2   :  { %v437_v56 = vor.u32 1.1754944e-38, %v436_v51  ;;  %vm435_vm6 = vcmp.eq.f32.partialorder %v434_v53, 8.507059e+37 }
  0xb3   :  { %v1874_v48 = vadd.f32 %v441_v46, %v440_v43 }
  0xb5   :  { %1494 = vtanh.f32 %v1874_v48 }
  0xb6   :  { %v1493_v47 = vpop.eup %1492 }
  0xb7   :  { %v426_v49 = vmul.f32 %v1493_v47, %v424_v36  ;;  %vm431_vm15 = vweird.f32 %v1493_v47 }
  0xb8   :  { %vm432_vm5 = vmor %vm430_vm4, %vm431_vm15 }
  0xb9   :  { %v427_v50 = vsub.f32 1.0, %v426_v49 }
  0xbb   :  { %v428_v52 = vmul.f32 %v1493_v47, %v427_v50  ;;  %v1495_v58 = vpop.eup %1494 }
  0xbd   :  { %v429_v55 = vadd.f32 %v1493_v47, %v428_v52 }
  0xbf   :  { %v433_v57 = vsel %vm432_vm5, %v1493_v47, %v429_v55 }
  0xc0   :  { %v438_v59 = vsel %vm435_vm6, %v437_v56, %v433_v57 }
  0xc1   :  { %v1889_v60 = vmul.f32 %v1495_v58, %v438_v59  ;;  %v1982_v58 = vld [vmem:[%s2112_s7 + $0x6] ss:$0 sm:$0xff] }
  0xc3   :  { %1384 = vmatmul.msk.f32.vlgmr.msrb.gmra.mxu0 %vm151_vm2, %v1889_v60  ;;  %1389 = vmatmul.msk.f32.vlgmr.msra.gmra.mxu3 %vm151_vm2, %v1889_v60 }
  0xc4   :  { %1416 = vmatpush.msk.msra.mxu3 %vm155_vm0, %v1415_v61  ;;  %1407 = vmatpush.msk.msrb.mxu0 %vm155_vm0, %v1406_v62 }
  0xc6   :  { %784 = vmatpush.msra.mxu3 %v1414_v63  ;;  %708 = vmatpush.msrb.mxu0 %v1405_v3 }
  0xcb   :  { %1394 = vmatmul.msk.f32.vlgmr.msra.gmra.mxu0 %vm151_vm2, %v1889_v60  ;;  %1398 = vmatmul.msk.f32.vlgmr.msrb.gmra.mxu3 %vm151_vm2, %v1889_v60 }
  0xcc   :  { %1433 = vmatpush.msk.msrb.mxu3 %vm155_vm0, %v1432_v4  ;;  %1425 = vmatpush.msk.msra.mxu0 %vm155_vm0, %v1424_v6 }
  0xce   :  { %918 = vmatpush.msrb.mxu3 %v1431_v7  ;;  %860 = vmatpush.msra.mxu0 %v1423_v8 }
  0xd3   :  { %1408 = vmatmul.msk.f32.vlgmr.msrb.gmra.mxu0 %vm151_vm2, %v1402_v12  ;;  %1417 = vmatmul.msk.f32.vlgmr.msra.gmra.mxu3 %vm151_vm2, %v1402_v12 }
  0xd4   :  { %1444 = vmatpush.msk.msra.mxu3 %vm155_vm0, %v1415_v61  ;;  %1439 = vmatpush.msk.msrb.mxu0 %vm155_vm0, %v1406_v62 }
  0xd6   :  { %1054 = vmatpush.msra.mxu3 %v1414_v63  ;;  %994 = vmatpush.msrb.mxu0 %v1405_v3 }
  0xdb   :  { %1434 = vmatmul.msk.f32.vlgmr.msrb.gmra.mxu3 %vm151_vm2, %v1402_v12  ;;  %1426 = vmatmul.msk.f32.vlgmr.msra.gmra.mxu0 %vm151_vm2, %v1402_v12 }
  0xdc   :  { %1453 = vmatpush.msk.msrb.mxu3 %vm155_vm0, %v1432_v4  ;;  %1449 = vmatpush.msk.msra.mxu0 %vm155_vm0, %v1424_v6 }
  0xde   :  { %1114 = vmatpush.msra.mxu0 %v1423_v8  ;;  %1156 = vmatpush.msrb.mxu3 %v1431_v7 }
  0xfb   :  { %v140_v0 = vpop.f32.mrf.mxu1 }
 0x103   :  { %v114_v5 = vpop.f32.mrf.mxu0 }
 0x104   :  { %v1946_v1 = vadd.f32 %v140_v0, %v114_v5 }
 0x105   :  { %v488_v13 = vpop.f32.mrf.mxu1 }
 0x10b   :  { %v548_v10 = vpop.f32.mrf.mxu2 }
 0x10d   :  { %v1948_v9 = vpop.f32.mrf.mxu1 }
 0x113   :  { %v650_v19 = vpop.f32.mrf.mxu2 }
 0x115   :  { %v733_v25 = vpop.f32.mrf.mxu1 }
 0x11b   :  { %v809_v30 = vpop.f32.mrf.mxu2 }
 0x11d   :  { %v885_v52 = vpop.f32.mrf.mxu1 }
 0x123   :  { %v943_v43 = vpop.f32.mrf.mxu2 }
 0x140   :  { %v465_v14 = vpop.f32.mrf.mxu0 }
 0x141   :  { %v489_v11 = vadd.f32 %v488_v13, %v465_v14 }
 0x143   :  { %v491_v21 = vadd.f32 %v1743_v26, %v489_v11  ;;  %v1961_v26 = vld [vmem:[%s2112_s7 + $0x5] ss:$0 sm:$0xff] }
 0x145   :  { %v1387_v23 = vmul.f32 -1.442695, %v491_v21 }
 0x146   :  { %v528_v16 = vpop.f32.mrf.mxu3 }
 0x147   :  { %v549_v17 = vadd.f32 %v548_v10, %v528_v16 }
 0x148   :  { %v588_v18 = vpop.f32.mrf.mxu0 }
 0x149   :  { %v551_v20 = vadd.f32 %v1773_v41, %v549_v17  ;;  %v609_v5 = vadd.f32 %v1948_v9, %v588_v18 }
 0x14b   :  { %v1392_v22 = vmul.f32 -1.442695, %v551_v20  ;;  %v611_v18 = vadd.f32 %v1838_v15, %v609_v5 }
 0x14d   :  { %1496 = vpow2.f32 %v1392_v22 }
 0x14e   :  { %v630_v24 = vpop.f32.mrf.mxu3  ;;  %1498 = vpow2.f32 %v1387_v23 }
 0x14f   :  { %v651_v34 = vadd.f32 %v650_v19, %v630_v24 }
 0x150   :  { %v710_v28 = vpop.f32.mrf.mxu0 }
 0x151   :  { %v734_v29 = vadd.f32 %v733_v25, %v710_v28  ;;  %v653_v40 = vadd.f32 %v1823_v2, %v651_v34 }
 0x153   :  { %v741_v31 = vadd.f32 %v1955_v27, %v734_v29  ;;  %v1497_v33 = vpop.eup %1496  ;;  %v1401_v49 = vmul.f32 -1.442695, %v653_v40 }
 0x154   :  { %v1499_v36 = vpop.eup %1498  ;;  %v1964_v38 = vadd.f32 1.0, %v1497_v33 }
 0x155   :  { %v1412_v32 = vmul.f32 -1.442695, %v741_v31  ;;  %v1966_v39 = vadd.f32 1.0, %v1499_v36  ;;  %v1403_v36 = vld [vmem:[%s2115_s4 + $0x8] sm:$0xff] }
 0x156   :  { %v786_v41 = vpop.f32.mrf.mxu3  ;;  %vm561_vm10 = vweird.f32 %v1964_v38  ;;  %v567_v15 = vand.u32 2147483648, %v1964_v38  ;;  %v565_v34 = vand.u32 2147483647, %v1964_v38 }
 0x157   :  { %1500 = vpow2.f32 %v1412_v32  ;;  %v810_v35 = vadd.f32 %v809_v30, %v786_v41  ;;  %vm501_vm6 = vweird.f32 %v1966_v39 }
 0x158   :  { %v862_v51 = vpop.f32.mrf.mxu0 }
 0x159   :  { %v817_v37 = vadd.f32 %v1961_v26, %v810_v35  ;;  %v886_v57 = vadd.f32 %v885_v52, %v862_v51 }
 0x15b   :  { %v1421_v42 = vmul.f32 -1.442695, %v817_v37  ;;  %v893_v4 = vadd.f32 %v1982_v58, %v886_v57 }
 0x15d   :  { %v1501_v44 = vpop.eup %1500  ;;  %1502 = vpow2.f32 %v1421_v42 }
 0x15e   :  { %1504 = vrcp.f32 %v1964_v38  ;;  %v745_v46 = vadd.f32 1.0, %v1501_v44  ;;  %v920_v47 = vpop.f32.mrf.mxu3 }
 0x15f   :  { %1506 = vrcp.f32 %v1966_v39  ;;  %v944_v50 = vadd.f32 %v943_v43, %v920_v47  ;;  %v505_v47 = vand.u32 2147483647, %v1966_v39 }
 0x160   :  { %1508 = vrcp.f32 %v745_v46  ;;  %vm751_vm1 = vweird.f32 %v745_v46  ;;  %v757_v19 = vand.u32 2147483648, %v745_v46  ;;  %v755_v22 = vand.u32 2147483647, %v745_v46 }
 0x161   :  { %v951_v2 = vadd.f32 %v1972_v45, %v944_v50  ;;  %1510 = vpow2.f32 %v1401_v49  ;;  %v507_v49 = vand.u32 2147483648, %v1966_v39 }
 0x162   :  { %v758_v31 = vor.u32 1.1754944e-38, %v757_v19  ;;  %vm756_vm13 = vcmp.eq.f32.partialorder %v755_v22, 8.507059e+37 }
 0x163   :  { %v1503_v53 = vpop.eup %1502  ;;  %v1438_v54 = vmul.f32 -1.442695, %v951_v2 }
 0x164   :  { %v1977_v55 = vpop.eup %1504  ;;  %v821_v56 = vadd.f32 1.0, %v1503_v53 }
 0x165   :  { %v1984_v59 = vpop.eup %1506  ;;  %1512 = vpow2.f32 %v1438_v54  ;;  %v557_v62 = vmul.f32 %v1977_v55, %v1964_v38  ;;  %vm562_vm11 = vweird.f32 %v1977_v55  ;;  %v568_v54 = vor.u32 1.1754944e-38, %v567_v15 }
 0x166   :  { %v1509_v61 = vpop.eup %1508  ;;  %1514 = vrcp.f32 %v821_v56  ;;  %v497_v3 = vmul.f32 %v1984_v59, %v1966_v39  ;;  %v833_v23 = vand.u32 2147483648, %v821_v56  ;;  %v831_v29 = vand.u32 2147483647, %v821_v56  ;;  %vm2025_vm5 = vmor %vm561_vm10, %vm562_vm11 }
 0x167   :  { %v747_v63 = vmul.f32 %v1509_v61, %v745_v46  ;;  %v1511_v6 = vpop.eup %1510  ;;  %v558_v12 = vsub.f32 1.0, %v557_v62  ;;  %1516 = vtanh.f32 %v893_v4  ;;  %vm752_vm7 = vweird.f32 %v1509_v61 }
 0x168   :  { %v498_v10 = vsub.f32 1.0, %v497_v3  ;;  %v1992_v14 = vadd.f32 1.0, %v1511_v6  ;;  %vm2001_vm8 = vmor %vm751_vm1, %vm752_vm7  ;;  %vm827_vm12 = vweird.f32 %v821_v56  ;;  %vm502_vm14 = vweird.f32 %v1984_v59 }
 0x169   :  { %v748_v7 = vsub.f32 1.0, %v747_v63  ;;  %v559_v20 = vmul.f32 %v1977_v55, %v558_v12  ;;  %v834_v35 = vor.u32 1.1754944e-38, %v833_v23  ;;  %vm832_vm4 = vcmp.eq.f32.partialorder %v831_v29, 8.507059e+37  ;;  %vm503_vm1 = vmor %vm501_vm6, %vm502_vm14 }
 0x16a   :  { %v499_v9 = vmul.f32 %v1984_v59, %v498_v10  ;;  %vm566_vm7 = vcmp.eq.f32.partialorder %v565_v34, 8.507059e+37  ;;  %v508_v39 = vor.u32 1.1754944e-38, %v507_v49  ;;  %vm663_vm14 = vweird.f32 %v1992_v14 }
 0x16b   :  { %v1513_v8 = vpop.eup %1512  ;;  %v749_v0 = vmul.f32 %v1509_v61, %v748_v7  ;;  %v560_v32 = vadd.f32 %v1977_v55, %v559_v20  ;;  %v669_v20 = vand.u32 2147483648, %v1992_v14 }
 0x16c   :  { %v1515_v13 = vpop.eup %1514  ;;  %v1994_v11 = vadd.f32 1.0, %v1513_v8  ;;  %v500_v40 = vadd.f32 %v1984_v59, %v499_v9 }
 0x16d   :  { %v823_v16 = vmul.f32 %v1515_v13, %v821_v56  ;;  %v750_v17 = vadd.f32 %v1509_v61, %v749_v0  ;;  %vm828_vm9 = vweird.f32 %v1515_v13  ;;  %v1517_v30 = vpop.eup %1516  ;;  %v564_v2 = vsel %vm2025_vm5, %v1977_v55, %v560_v32 }
 0x16e   :  { %1518 = vrcp.f32 %v1994_v11  ;;  %vm829_vm15 = vmor %vm827_vm12, %vm828_vm9  ;;  %v504_v38 = vsel %vm503_vm1, %v1984_v59, %v500_v40  ;;  %vm506_vm9 = vcmp.eq.f32.partialorder %v505_v47, 8.507059e+37  ;;  %v967_v55 = vand.u32 2147483648, %v1994_v11 }
 0x16f   :  { %v824_v21 = vsub.f32 1.0, %v823_v16  ;;  %1520 = vrcp.f32 %v1992_v14  ;;  %v754_v28 = vsel %vm2001_vm8, %v1509_v61, %v750_v17  ;;  %v569_v61 = vsel %vm566_vm7, %v568_v54, %v564_v2 }
 0x170   :  { %v759_v37 = vsel %vm756_vm13, %v758_v31, %v754_v28  ;;  %1522 = vtanh.f32 %v611_v18  ;;  %v509_v3 = vsel %vm506_vm9, %v508_v39, %v504_v38  ;;  %vm961_vm10 = vweird.f32 %v1994_v11  ;;  %v1016_v28 = vpop.f32.mrf.mxu1 }
 0x171   :  { %v825_v25 = vmul.f32 %v1515_v13, %v824_v21  ;;  %v972_v53 = vmul.f32 %v1517_v30, %v759_v37  ;;  %v965_v59 = vand.u32 2147483647, %v1994_v11  ;;  %v673_v4 = vmul.f32 %v569_v61, %v1874_v48  ;;  %v1208_v48 = vld [vmem:[%s2116_s9] sm:$0xff]  ;;  %v1076_v30 = vpop.f32.mrf.mxu2 }
 0x172   :  { %v968_v5 = vor.u32 1.1754944e-38, %v967_v55  ;;  %v667_v21 = vand.u32 2147483647, %v1992_v14  ;;  %v670_v18 = vor.u32 1.1754944e-38, %v669_v20 }
 0x173   :  { %v826_v41 = vadd.f32 %v1515_v13, %v825_v25  ;;  %vm966_vm12 = vcmp.eq.f32.partialorder %v965_v59, 8.507059e+37 }
 0x174   :  { %v1519_v33 = vpop.eup %1518 }
 0x175   :  { %v957_v42 = vmul.f32 %v1519_v33, %v1994_v11  ;;  %v830_v43 = vsel %vm829_vm15, %v1515_v13, %v826_v41  ;;  %v2019_v44 = vpop.eup %1520  ;;  %vm962_vm8 = vweird.f32 %v1519_v33  ;;  %v1209_v11 = vld [vmem:[%s2116_s9 + $0x8] sm:$0x3] }
 0x176   :  { %v835_v50 = vsel %vm832_vm4, %v834_v35, %v830_v43  ;;  %v659_v62 = vmul.f32 %v2019_v44, %v1992_v14  ;;  %vm963_vm11 = vmor %vm961_vm10, %vm962_vm8  ;;  %v1523_v6 = vpop.eup %1522  ;;  %vm664_vm13 = vweird.f32 %v2019_v44  ;;  %vm668_vm4 = vcmp.eq.f32.partialorder %v667_v21, 8.507059e+37  ;;  %v1461_v35 = vld [vmem:[%s2116_s9 + $0x18] sm:$0x3] }
 0x177   :  { %v958_v51 = vsub.f32 1.0, %v957_v42  ;;  %v971_v52 = vmul.f32 %v1403_v36, %v835_v50  ;;  %v674_v12 = vmul.f32 %v1523_v6, %v509_v3  ;;  %vm665_vm15 = vmor %vm663_vm14, %vm664_vm13  ;;  %1462 = vmatpush.msk.msrb.mxu1 %vm155_vm0, %v1461_v35 }
 0x178   :  { %v660_v7 = vsub.f32 1.0, %v659_v62  ;;  %v1136_v49 = vpop.f32.mrf.mxu1 }
 0x179   :  { %v959_v56 = vmul.f32 %v1519_v33, %v958_v51  ;;  %v2038_v57 = vadd.f32 %v972_v53, %v971_v52  ;;  %v675_v13 = vadd.f32 %v674_v12, %v673_v4  ;;  %v1178_v36 = vpop.f32.mrf.mxu2 }
 0x17a   :  { %v661_v16 = vmul.f32 %v2019_v44, %v660_v7 }
 0x17b   :  { %1524 = vtanh.f32 %v2038_v57  ;;  %v960_v63 = vadd.f32 %v1519_v33, %v959_v56 }
 0x17c   :  { %1526 = vtanh.f32 %v675_v13  ;;  %v662_v19 = vadd.f32 %v2019_v44, %v661_v16 }
 0x17d   :  { %v964_v8 = vsel %vm963_vm11, %v1519_v33, %v960_v63 }
 0x17e   :  { %v969_v10 = vsel %vm966_vm12, %v968_v5, %v964_v8  ;;  %v666_v22 = vsel %vm665_vm15, %v2019_v44, %v662_v19 }
 0x17f   :  { %v671_v23 = vsel %vm668_vm4, %v670_v18, %v666_v22 }
 0x181   :  { %v1525_v0 = vpop.eup %1524 }
 0x182   :  { %v2048_v17 = vmul.f32 %v1525_v0, %v969_v10  ;;  %v1527_v9 = vpop.eup %1526 }
 0x183   :  { %v677_v24 = vmul.f32 %v1527_v9, %v671_v23 }
 0x184   :  { %1440 = vmatmul.msk.f32.vlgmr.msrb.gmra.mxu0 %vm151_vm2, %v2048_v17  ;;  %1445 = vmatmul.msk.f32.vlgmr.msra.gmra.mxu3 %vm151_vm2, %v2048_v17 }
 0x185   :  { %1458 = vmatpush.msk.msrb.mxu0 %vm155_vm0, %v1209_v11  ;;  %v1206_v25 = vadd.f32 %v677_v24, %v1889_v60  ;;  %v1460_v60 = vld [vmem:[%s2116_s9 + $0x10] sm:$0xff] }
 0x186   :  { %1261 = vmatpush.msrb.mxu1 %v1460_v60 }
 0x187   :  { %1231 = vmatpush.msrb.mxu0 %v1208_v48 }
 0x18c   :  { %1450 = vmatmul.msk.f32.vlgmr.msra.gmra.mxu0 %vm151_vm2, %v2048_v17  ;;  %1454 = vmatmul.msk.f32.vlgmr.msrb.gmra.mxu3 %vm151_vm2, %v2048_v17 }
 0x194   :  { %1459 = vmatmul.msk.f32.vlgmr.msrb.gmra.mxu0 %vm151_vm2, %v1206_v25 }
 0x201   :  { %v996_v14 = vpop.f32.mrf.mxu0 }
 0x202   :  { %v1017_v29 = vadd.f32 %v1016_v28, %v996_v14 }
 0x204   :  { %v1019_v15 = vadd.f32 %v1955_v27, %v1017_v29 }
 0x206   :  { %v1443_v31 = vmul.f32 -1.442695, %v1019_v15  ;;  %v1273_v15 = vld [vmem:[%s2118_s11] sm:$0xff] }
 0x207   :  { %v1056_v32 = vpop.f32.mrf.mxu3 }
 0x208   :  { %1528 = vpow2.f32 %v1443_v31  ;;  %v1077_v41 = vadd.f32 %v1076_v30, %v1056_v32  ;;  %v1274_v30 = vld [vmem:[%s2118_s11 + $0x8] sm:$0xff] }
 0x209   :  { %v1116_v47 = vpop.f32.mrf.mxu0 }
 0x20a   :  { %v1079_v33 = vadd.f32 %v1961_v26, %v1077_v41  ;;  %v1137_v51 = vadd.f32 %v1136_v49, %v1116_v47  ;;  %v1478_v41 = vld [vmem:[%s2117_s10] ss:$0 sm:$0xff] }
 0x20c   :  { %v1448_v34 = vmul.f32 -1.442695, %v1079_v33  ;;  %v1139_v56 = vadd.f32 %v1982_v58, %v1137_v51 }
 0x20e   :  { %v1529_v37 = vpop.eup %1528  ;;  %1530 = vpow2.f32 %v1448_v34 }
 0x20f   :  { %v1023_v27 = vadd.f32 1.0, %v1529_v37  ;;  %v1158_v40 = vpop.f32.mrf.mxu3 }
 0x210   :  { %v1179_v42 = vadd.f32 %v1178_v36, %v1158_v40 }
 0x211   :  { %1532 = vrcp.f32 %v1023_v27  ;;  %vm1029_vm5 = vweird.f32 %v1023_v27  ;;  %v1033_v63 = vand.u32 2147483647, %v1023_v27  ;;  %v1233_v31 = vpop.f32.mrf.mxu0 }
 0x212   :  { %v1181_v26 = vadd.f32 %v1972_v45, %v1179_v42  ;;  %v1035_v45 = vand.u32 2147483648, %v1023_v27  ;;  %v1236_v32 = vadd.f32 %v1233_v31, %v1946_v1 }
 0x213   :  { %vm1034_vm8 = vcmp.eq.f32.partialorder %v1033_v63, 8.507059e+37 }
 0x214   :  { %v1531_v43 = vpop.eup %1530  ;;  %v1457_v44 = vmul.f32 -1.442695, %v1181_v26  ;;  %v1036_v7 = vor.u32 1.1754944e-38, %v1035_v45 }
 0x215   :  { %v1083_v46 = vadd.f32 1.0, %v1531_v43 }
 0x216   :  { %1534 = vpow2.f32 %v1457_v44 }
 0x217   :  { %v1533_v50 = vpop.eup %1532  ;;  %1536 = vrcp.f32 %v1083_v46  ;;  %v1095_v3 = vand.u32 2147483648, %v1083_v46  ;;  %v1093_v6 = vand.u32 2147483647, %v1083_v46  ;;  %vm1089_vm7 = vweird.f32 %v1083_v46 }
 0x218   :  { %v1025_v2 = vmul.f32 %v1533_v50, %v1023_v27  ;;  %vm1030_vm0 = vweird.f32 %v1533_v50 }
 0x219   :  { %vm1031_vm6 = vmor %vm1029_vm5, %vm1030_vm0  ;;  %v1096_v12 = vor.u32 1.1754944e-38, %v1095_v3  ;;  %vm1094_vm10 = vcmp.eq.f32.partialorder %v1093_v6, 8.507059e+37  ;;  %vm1326_vm0 = vcmask 7168  }
 0x21a   :  { %v1026_v52 = vsub.f32 1.0, %v1025_v2 }
 0x21c   :  { %v1535_v53 = vpop.eup %1534  ;;  %v1027_v54 = vmul.f32 %v1533_v50, %v1026_v52 }
 0x21d   :  { %v1537_v38 = vpop.eup %1536  ;;  %v1185_v39 = vadd.f32 1.0, %v1535_v53 }
 0x21e   :  { %v1085_v61 = vmul.f32 %v1537_v38, %v1083_v46  ;;  %v1028_v62 = vadd.f32 %v1533_v50, %v1027_v54  ;;  %vm1090_vm1 = vweird.f32 %v1537_v38 }
 0x21f   :  { %1538 = vrcp.f32 %v1185_v39  ;;  %vm1091_vm9 = vmor %vm1089_vm7, %vm1090_vm1  ;;  %v1197_v22 = vand.u32 2147483648, %v1185_v39  ;;  %vm1191_vm12 = vweird.f32 %v1185_v39  ;;  %v1195_v18 = vand.u32 2147483647, %v1185_v39 }
 0x220   :  { %v1086_v55 = vsub.f32 1.0, %v1085_v61  ;;  %1540 = vtanh.f32 %v1139_v56  ;;  %v1032_v4 = vsel %vm1031_vm6, %v1533_v50, %v1028_v62 }
 0x221   :  { %v1037_v5 = vsel %vm1034_vm8, %v1036_v7, %v1032_v4  ;;  %v1198_v24 = vor.u32 1.1754944e-38, %v1197_v22  ;;  %vm1196_vm14 = vcmp.eq.f32.partialorder %v1195_v18, 8.507059e+37 }
 0x222   :  { %v1087_v59 = vmul.f32 %v1537_v38, %v1086_v55 }
 0x224   :  { %v1088_v58 = vadd.f32 %v1537_v38, %v1087_v59 }
 0x225   :  { %v1539_v8 = vpop.eup %1538 }
 0x226   :  { %v1092_v0 = vsel %vm1091_vm9, %v1537_v38, %v1088_v58  ;;  %v1187_v13 = vmul.f32 %v1539_v8, %v1185_v39  ;;  %v1541_v10 = vpop.eup %1540  ;;  %vm1192_vm11 = vweird.f32 %v1539_v8 }
 0x227   :  { %v1097_v16 = vsel %vm1094_vm10, %v1096_v12, %v1092_v0  ;;  %v1202_v48 = vmul.f32 %v1541_v10, %v1037_v5  ;;  %vm1193_vm13 = vmor %vm1191_vm12, %vm1192_vm11 }
 0x228   :  { %v1201_v11 = vmul.f32 %v1097_v16, %v2038_v57  ;;  %v1188_v19 = vsub.f32 1.0, %v1187_v13  ;;  %v1275_v57 = vld [vmem:[%s2118_s11 + $0x10] sm:$0xf] }
 0x229   :  { %1464 = vmatpush.msk.msra.mxu3 %vm93_vm3, %v1275_v57 }
 0x22a   :  { %v1203_v20 = vadd.f32 %v1202_v48, %v1201_v11  ;;  %v1189_v21 = vmul.f32 %v1539_v8, %v1188_v19 }
 0x22b   :  { %1301 = vmatpush.msra.mxu3 %v1274_v30 }
 0x22c   :  { %1542 = vtanh.f32 %v1203_v20  ;;  %v1190_v9 = vadd.f32 %v1539_v8, %v1189_v21 }
 0x22d   :  { %1302 = vmatpush.msra.mxu3 %v1273_v15 }
 0x22e   :  { %v1194_v23 = vsel %vm1193_vm13, %v1539_v8, %v1190_v9 }
 0x22f   :  { %v1199_v28 = vsel %vm1196_vm14, %v1198_v24, %v1194_v23 }
 0x232   :  { %v1543_v25 = vpop.eup %1542 }
 0x233   :  { %v1205_v14 = vmul.f32 %v1543_v25, %v1199_v28 }
 0x235   :  { %v1207_v29 = vadd.f32 %v1205_v14, %v2048_v17  ;;  %v18_v17 = vstv %s2119_s12 }
 0x236   :  { %19 = vst [vmem:[#allocation2] sm:$0x1] %v18_v17 }
 0x237   :  { %1463 = vmatmul.msk.f32.vlgmr.msrb.gmra.mxu1 %vm151_vm2, %v1207_v29  ;;  %vm1280_vm2 = vcmask 162816  }
 0x23d   :  { %v1479_v36 = vld [vmem:[#allocation2] ss:$0 sm:$0xff] }
 0x2b4   :  { %v1263_v33 = vpop.f32.mrf.mxu1 }
 0x2b5   :  { %v1266_v34 = vadd.f32 %v1263_v33, %v1236_v32 }
 0x2b7   :  { %v1271_v35 = vadd.f32 %v1478_v41, %v1266_v34 }
 0x2b9   :  { %1544 = vtanh.f32 %v1271_v35 }
 0x2bf   :  { %v1545_v60 = vpop.eup %1544 }
 0x2c0   :  { %1465 = vmatmul.msk.f32.vlgmr.msra.gmra.mxu3 %vm1280_vm2, %v1545_v60 }
 0x343   :  { %v1304_v37 = vpop.f32.mrf.mxu3 }
 0x344   :  { %v1305_v27 = vadd.f32 %v1479_v36, %v1304_v37 }
 0x346   :  { %v1466_v40 = vmul.f32 -1.442695, %v1305_v27 }
 0x348   :  { %1546 = vpow2.f32 %v1466_v40 }
 0x34e   :  { %v1547_v42 = vpop.eup %1546 }
 0x34f   :  { %v1310_v26 = vadd.f32 1.0, %v1547_v42 }
 0x351   :  { %1548 = vrcp.f32 %v1310_v26  ;;  %v1322_v46 = vand.u32 2147483648, %v1310_v26  ;;  %v1320_v49 = vand.u32 2147483647, %v1310_v26  ;;  %vm1316_vm15 = vweird.f32 %v1310_v26 }
 0x353   :  { %v1323_v2 = vor.u32 1.1754944e-38, %v1322_v46  ;;  %vm1321_vm5 = vcmp.eq.f32.partialorder %v1320_v49, 8.507059e+37 }
 0x357   :  { %v1549_v1 = vpop.eup %1548 }
 0x358   :  { %v1312_v43 = vmul.f32 %v1549_v1, %v1310_v26  ;;  %vm1317_vm3 = vweird.f32 %v1549_v1 }
 0x359   :  { %vm1318_vm4 = vmor %vm1316_vm15, %vm1317_vm3 }
 0x35a   :  { %v1313_v44 = vsub.f32 1.0, %v1312_v43 }
 0x35c   :  { %v1314_v47 = vmul.f32 %v1549_v1, %v1313_v44 }
 0x35e   :  { %v1315_v50 = vadd.f32 %v1549_v1, %v1314_v47 }
 0x360   :  { %v1319_v51 = vsel %vm1318_vm4, %v1549_v1, %v1315_v50 }
 0x361   :  { %v1324_v52 = vsel %vm1321_vm5, %v1323_v2, %v1319_v51 }
 0x362   :  { %1327 = vst.msk [vmem:[%s2120_s13] sm:$0xff] %vm1326_vm0, %v1324_v52 }

</bundles_post_ra>
